<compile_context>
chip_gen: v6e
topology: v6e:2x2x1
jax: 0.10.0
libtpu: 0.0.40
codegen_flags: <defaults>
</compile_context>

<pallas_src>
import functools

import jax
import jax.numpy as jnp
import numpy as np
from jax.experimental import pallas as pl
from jax.experimental.pallas import tpu as pltpu


# ----------------------------------------------------------------------------
# Softplus matching torch.nn.Softplus(beta=1, threshold=20)
# (single-exp numerically-safe form; for x > 20 the correction term is < 3e-9,
#  far below float32 resolution of x, so it matches the threshold branch.)
# ----------------------------------------------------------------------------
def _softplus(x):
    return jnp.maximum(x, 0.0) + jnp.log1p(jnp.exp(-jnp.abs(x)))


# ----------------------------------------------------------------------------
# MEGConv configuration (matches the PyTorch module's __init__)
# ----------------------------------------------------------------------------
ATTN_ORDER = ["atom", "bond", "global"]
IN_FEATS = {"atom": 14, "bond": 10, "global": 6}
OUT_FEATS = [32, 32, 32]          # num_fc_layers = 3
D = OUT_FEATS[-1]
FIRST_BLOCK = True
RESIDUAL = False                  # module default

_VMEM_SPEC = pl.BlockSpec(memory_space=pltpu.MemorySpace.VMEM)


# ----------------------------------------------------------------------------
# Fused MEGConv forward kernel: everything in one pallas_call, all
# intermediates kept on-chip.
# ----------------------------------------------------------------------------
def _megconv_kernel(*refs, names):
    n_in = len(names)
    r = dict(zip(names, refs[:n_in]))
    atom_o, bond_o, glob_o = refs[n_in:n_in + 3]

    def dot(a, b):
        return jnp.dot(a, b, preferred_element_type=jnp.float32)

    # ---- 1) linear_fc (first_block): 2-layer LinearN, Softplus after both --
    def first_fc(x, p):
        h = _softplus(dot(x, r[f"fc_{p}_W0"][...]) + r[f"fc_{p}_b0"][...])
        return _softplus(dot(h, r[f"fc_{p}_W1"][...]) + r[f"fc_{p}_b1"][...])

    atom_l = first_fc(r["atom_in"][...], "atom")
    bond_l = first_fc(r["bond_in"][...], "bond")
    glob_l = first_fc(r["glob_in"][...], "global")

    # ---- 2) AtomUpdateLayer: [atom, mean(bond), mean(global)] -> 3-layer MLP
    mean_bond = dot(r["B2A"][...], bond_l)
    mean_glob = dot(r["G2A"][...], glob_l)
    h = (dot(atom_l, r["at_W0_m"][...])
         + dot(mean_bond, r["at_W0_nb"][...])
         + dot(mean_glob, r["at_W0_ng"][...])
         + r["at_b0"][...])
    h = _softplus(h)
    h = _softplus(dot(h, r["at_W1"][...]) + r["at_b1"][...])
    atom_u = dot(h, r["at_W2"][...]) + r["at_b2"][...]

    # ---- 3) BondUpdateLayer: [bond, atom0, atom1, global] -> 3-layer MLP ---
    a0 = dot(r["SEL0"][...], atom_u)            # uses UPDATED atom features
    a1 = dot(r["SEL1"][...], atom_u)
    g_b = dot(r["G2B"][...], glob_l)
    h = (dot(bond_l, r["bd_W0_m"][...])
         + dot(a0, r["bd_W0_a0"][...])
         + dot(a1, r["bd_W0_a1"][...])
         + dot(g_b, r["bd_W0_g"][...])
         + r["bd_b0"][...])
    h = _softplus(h)
    h = _softplus(dot(h, r["bd_W1"][...]) + r["bd_b1"][...])
    bond_u = dot(h, r["bd_W2"][...]) + r["bd_b2"][...]

    # ---- 4) GlobalUpdateLayer: [global, mean(atom), mean(bond)] -> MLP -----
    mean_atom = dot(r["A2G"][...], atom_u)       # updated atom features
    mean_bond_g = dot(r["B2G"][...], bond_u)     # updated bond features
    h = (dot(glob_l, r["gl_W0_m"][...])
         + dot(mean_atom, r["gl_W0_na"][...])
         + dot(mean_bond_g, r["gl_W0_nb"][...])
         + r["gl_b0"][...])
    h = _softplus(h)
    h = _softplus(dot(h, r["gl_W1"][...]) + r["gl_b1"][...])
    glob_u = dot(h, r["gl_W2"][...]) + r["gl_b2"][...]

    atom_o[...] = atom_u
    bond_o[...] = bond_u
    glob_o[...] = glob_u


# ----------------------------------------------------------------------------
# Deterministic parameter init (PyTorch nn.Linear default: U(-1/sqrt(fan_in)..))
# ----------------------------------------------------------------------------
def _linear_init(key, fan_in, fan_out):
    k = 1.0 / np.sqrt(fan_in)
    kw, kb = jax.random.split(key)
    W = jax.random.uniform(kw, (fan_in, fan_out), jnp.float32, -k, k)
    b = jax.random.uniform(kb, (1, fan_out), jnp.float32, -k, k)
    return W, b


def _mlp_init(key, sizes):
    Ws, bs = [], []
    keys = jax.random.split(key, len(sizes) - 1)
    for kk, fi, fo in zip(keys, sizes[:-1], sizes[1:]):
        W, b = _linear_init(kk, fi, fo)
        Ws.append(W)
        bs.append(b)
    return Ws, bs


def build_params(key):
    ks = jax.random.split(key, 6)
    params = {"fc": {}}
    # linear_fc (first_block=True): in -> out_feats[0] -> out_feats[-1]
    params["fc"]["atom"] = _mlp_init(ks[0], [IN_FEATS["atom"], OUT_FEATS[0], D])
    params["fc"]["bond"] = _mlp_init(ks[1], [IN_FEATS["bond"], OUT_FEATS[0], D])
    params["fc"]["global"] = _mlp_init(ks[2], [IN_FEATS["global"], OUT_FEATS[0], D])
    # AtomUpdateLayer:  in_size = atom + bond + global = 3D
    params["atom"] = _mlp_init(ks[3], [3 * D] + OUT_FEATS)
    # BondUpdateLayer:  in_size = bond + 2*atom + global = 4D
    params["bond"] = _mlp_init(ks[4], [4 * D] + OUT_FEATS)
    # GlobalUpdateLayer (= AtomUpdateLayer): in_size = 3D
    params["global"] = _mlp_init(ks[5], [3 * D] + OUT_FEATS)
    return params


# ----------------------------------------------------------------------------
# Synthetic hetero graph -> dense incidence / selection matrices
# (two molecules, each a 4-atom ring: 8 atoms, 8 bonds, 2 globals)
# ----------------------------------------------------------------------------
def build_graph():
    bond_atoms = np.array([[0, 1], [1, 2], [2, 3], [3, 0],
                           [4, 5], [5, 6], [6, 7], [7, 4]], dtype=np.int32)
    atom_mol = np.array([0, 0, 0, 0, 1, 1, 1, 1], dtype=np.int32)
    bond_mol = np.array([0, 0, 0, 0, 1, 1, 1, 1], dtype=np.int32)
    Na, Nb, Ng = 8, len(bond_atoms), 2

    B2A = np.zeros((Na, Nb), np.float32)              # mean over incident bonds
    for b, (i, j) in enumerate(bond_atoms):
        B2A[i, b] = 1.0
        B2A[j, b] = 1.0
    B2A /= B2A.sum(1, keepdims=True)

    G2A = np.zeros((Na, Ng), np.float32)              # mean over (single) global
    G2A[np.arange(Na), atom_mol] = 1.0

    SEL0 = np.zeros((Nb, Na), np.float32)             # first atom of each bond
    SEL1 = np.zeros((Nb, Na), np.float32)             # second atom of each bond
    SEL0[np.arange(Nb), bond_atoms[:, 0]] = 1.0
    SEL1[np.arange(Nb), bond_atoms[:, 1]] = 1.0

    G2B = np.zeros((Nb, Ng), np.float32)              # the bond's single global
    G2B[np.arange(Nb), bond_mol] = 1.0

    A2G = np.zeros((Ng, Na), np.float32)              # mean over atoms per mol
    A2G[atom_mol, np.arange(Na)] = 1.0
    A2G /= A2G.sum(1, keepdims=True)

    B2G = np.zeros((Ng, Nb), np.float32)              # mean over bonds per mol
    B2G[bond_mol, np.arange(Nb)] = 1.0
    B2G /= B2G.sum(1, keepdims=True)

    mats = dict(B2A=B2A, G2A=G2A, SEL0=SEL0, SEL1=SEL1, G2B=G2B, A2G=A2G, B2G=B2G)
    return {k: jnp.asarray(v) for k, v in mats.items()}, (Na, Nb, Ng)


# ----------------------------------------------------------------------------
# One-time preparation of the fused kernel's constant inputs
# (graph matrices + all weights; first-layer update weights split row-wise so
#  the kernel needs no concatenation).
# ----------------------------------------------------------------------------
def prepare_const_inputs(mats, params):
    names, args = [], []

    def add(n, a):
        names.append(n)
        args.append(jnp.asarray(a, jnp.float32))

    for k in ["B2A", "G2A", "SEL0", "SEL1", "G2B", "A2G", "B2G"]:
        add(k, mats[k])

    for nt in ATTN_ORDER:
        Ws, bs = params["fc"][nt]
        add(f"fc_{nt}_W0", Ws[0]); add(f"fc_{nt}_b0", bs[0])
        add(f"fc_{nt}_W1", Ws[1]); add(f"fc_{nt}_b1", bs[1])

    # Atom update: W0 is (3D, D) for cat([atom, mean_bond, mean_glob]) -> split.
    Ws, bs = params["atom"]
    add("at_W0_m", Ws[0][0:D]); add("at_W0_nb", Ws[0][D:2 * D])
    add("at_W0_ng", Ws[0][2 * D:3 * D]); add("at_b0", bs[0])
    add("at_W1", Ws[1]); add("at_b1", bs[1])
    add("at_W2", Ws[2]); add("at_b2", bs[2])

    # Bond update: W0 is (4D, D) for cat([bond, a0, a1, global]) -> split.
    Ws, bs = params["bond"]
    add("bd_W0_m", Ws[0][0:D]); add("bd_W0_a0", Ws[0][D:2 * D])
    add("bd_W0_a1", Ws[0][2 * D:3 * D]); add("bd_W0_g", Ws[0][3 * D:4 * D])
    add("bd_b0", bs[0])
    add("bd_W1", Ws[1]); add("bd_b1", bs[1])
    add("bd_W2", Ws[2]); add("bd_b2", bs[2])

    # Global update: W0 is (3D, D) for cat([global, mean_atom, mean_bond]).
    Ws, bs = params["global"]
    add("gl_W0_m", Ws[0][0:D]); add("gl_W0_na", Ws[0][D:2 * D])
    add("gl_W0_nb", Ws[0][2 * D:3 * D]); add("gl_b0", bs[0])
    add("gl_W1", Ws[1]); add("gl_b1", bs[1])
    add("gl_W2", Ws[2]); add("gl_b2", bs[2])

    return tuple(names), tuple(args)


# ----------------------------------------------------------------------------
# MEGConv forward: a single fused pallas_call.
# ----------------------------------------------------------------------------
def megconv_forward(const_names, const_args, feats):
    all_names = ("atom_in", "bond_in", "glob_in") + const_names
    all_args = (feats["atom"], feats["bond"], feats["global"]) + const_args
    n_in = len(all_args)

    kern = functools.partial(_megconv_kernel, names=all_names)
    out_shape = (
        jax.ShapeDtypeStruct((feats["atom"].shape[0], D), jnp.float32),
        jax.ShapeDtypeStruct((feats["bond"].shape[0], D), jnp.float32),
        jax.ShapeDtypeStruct((feats["global"].shape[0], D), jnp.float32),
    )
    atom_u, bond_u, glob_u = pl.pallas_call(
        kern,
        out_shape=out_shape,
        in_specs=[_VMEM_SPEC] * n_in,
        out_specs=(_VMEM_SPEC, _VMEM_SPEC, _VMEM_SPEC),
        compiler_params=pltpu.CompilerParams(vmem_limit_bytes=8 * 1024 * 1024),
    )(*all_args)
    # RESIDUAL is False (module default); with residual the kernel would also
    # emit the linear_fc features and the sum would be added here.
    return {"atom": atom_u, "bond": bond_u, "global": glob_u}


# ----------------------------------------------------------------------------
# Pure-JAX reference (same math, full weights + concatenation, no Pallas)
# ----------------------------------------------------------------------------
def _ref_mlp(x, Ws, bs, acts):
    h = x
    for W, b, a in zip(Ws, bs, acts):
        h = h @ W + b
        if a:
            h = _softplus(h)
    return h


def ref_forward(mats, feats, params):
    lf = {nt: _ref_mlp(feats[nt], params["fc"][nt][0], params["fc"][nt][1],
                       [True, True]) for nt in ATTN_ORDER}
    upd = dict(lf)
    x = jnp.concatenate([upd["atom"], mats["B2A"] @ upd["bond"],
                         mats["G2A"] @ upd["global"]], axis=1)
    upd["atom"] = _ref_mlp(x, params["atom"][0], params["atom"][1],
                           [True, True, False])
    x = jnp.concatenate([upd["bond"], mats["SEL0"] @ upd["atom"],
                         mats["SEL1"] @ upd["atom"],
                         mats["G2B"] @ upd["global"]], axis=1)
    upd["bond"] = _ref_mlp(x, params["bond"][0], params["bond"][1],
                           [True, True, False])
    x = jnp.concatenate([upd["global"], mats["A2G"] @ upd["atom"],
                         mats["B2G"] @ upd["bond"]], axis=1)
    upd["global"] = _ref_mlp(x, params["global"][0], params["global"][1],
                             [True, True, False])
    if RESIDUAL:
        for k in upd:
            upd[k] = upd[k] + lf[k]
    return upd


# ----------------------------------------------------------------------------
if __name__ == "__main__":
    key = jax.random.PRNGKey(0)
    k_par, k_a, k_b, k_g = jax.random.split(key, 4)

    mats, (Na, Nb, Ng) = build_graph()
    params = build_params(k_par)
    const_names, const_args = prepare_const_inputs(mats, params)

    feats = {
        "atom":   jax.random.normal(k_a, (Na, IN_FEATS["atom"]), jnp.float32),
        "bond":   jax.random.normal(k_b, (Nb, IN_FEATS["bond"]), jnp.float32),
        "global": jax.random.normal(k_g, (Ng, IN_FEATS["global"]), jnp.float32),
    }

    out = megconv_forward(const_names, const_args, feats)
    out = jax.block_until_ready(out)

    ref = jax.block_until_ready(ref_forward(mats, feats, params))
    for k in ATTN_ORDER:
        assert out[k].shape == (feats[k].shape[0], D), (k, out[k].shape)
        np.testing.assert_allclose(np.asarray(out[k]), np.asarray(ref[k]),
                                   rtol=1e-2, atol=1e-2)

    print("KERNEL_OK")
</pallas_src>

<mosaic_0001>
module attributes {stable_mosaic.version = 11 : i64} {
  func.func @_megconv_kernel(%arg0: memref<8x14xf32, #tpu.memory_space<vmem>>, %arg1: memref<8x10xf32, #tpu.memory_space<vmem>>, %arg2: memref<2x6xf32, #tpu.memory_space<vmem>>, %arg3: memref<8x8xf32, #tpu.memory_space<vmem>>, %arg4: memref<8x2xf32, #tpu.memory_space<vmem>>, %arg5: memref<8x8xf32, #tpu.memory_space<vmem>>, %arg6: memref<8x8xf32, #tpu.memory_space<vmem>>, %arg7: memref<8x2xf32, #tpu.memory_space<vmem>>, %arg8: memref<2x8xf32, #tpu.memory_space<vmem>>, %arg9: memref<2x8xf32, #tpu.memory_space<vmem>>, %arg10: memref<14x32xf32, #tpu.memory_space<vmem>>, %arg11: memref<1x32xf32, #tpu.memory_space<vmem>>, %arg12: memref<32x32xf32, #tpu.memory_space<vmem>>, %arg13: memref<1x32xf32, #tpu.memory_space<vmem>>, %arg14: memref<10x32xf32, #tpu.memory_space<vmem>>, %arg15: memref<1x32xf32, #tpu.memory_space<vmem>>, %arg16: memref<32x32xf32, #tpu.memory_space<vmem>>, %arg17: memref<1x32xf32, #tpu.memory_space<vmem>>, %arg18: memref<6x32xf32, #tpu.memory_space<vmem>>, %arg19: memref<1x32xf32, #tpu.memory_space<vmem>>, %arg20: memref<32x32xf32, #tpu.memory_space<vmem>>, %arg21: memref<1x32xf32, #tpu.memory_space<vmem>>, %arg22: memref<32x32xf32, #tpu.memory_space<vmem>>, %arg23: memref<32x32xf32, #tpu.memory_space<vmem>>, %arg24: memref<32x32xf32, #tpu.memory_space<vmem>>, %arg25: memref<1x32xf32, #tpu.memory_space<vmem>>, %arg26: memref<32x32xf32, #tpu.memory_space<vmem>>, %arg27: memref<1x32xf32, #tpu.memory_space<vmem>>, %arg28: memref<32x32xf32, #tpu.memory_space<vmem>>, %arg29: memref<1x32xf32, #tpu.memory_space<vmem>>, %arg30: memref<32x32xf32, #tpu.memory_space<vmem>>, %arg31: memref<32x32xf32, #tpu.memory_space<vmem>>, %arg32: memref<32x32xf32, #tpu.memory_space<vmem>>, %arg33: memref<32x32xf32, #tpu.memory_space<vmem>>, %arg34: memref<1x32xf32, #tpu.memory_space<vmem>>, %arg35: memref<32x32xf32, #tpu.memory_space<vmem>>, %arg36: memref<1x32xf32, #tpu.memory_space<vmem>>, %arg37: memref<32x32xf32, #tpu.memory_space<vmem>>, %arg38: memref<1x32xf32, #tpu.memory_space<vmem>>, %arg39: memref<32x32xf32, #tpu.memory_space<vmem>>, %arg40: memref<32x32xf32, #tpu.memory_space<vmem>>, %arg41: memref<32x32xf32, #tpu.memory_space<vmem>>, %arg42: memref<1x32xf32, #tpu.memory_space<vmem>>, %arg43: memref<32x32xf32, #tpu.memory_space<vmem>>, %arg44: memref<1x32xf32, #tpu.memory_space<vmem>>, %arg45: memref<32x32xf32, #tpu.memory_space<vmem>>, %arg46: memref<1x32xf32, #tpu.memory_space<vmem>>, %arg47: memref<8x32xf32, #tpu.memory_space<vmem>>, %arg48: memref<8x32xf32, #tpu.memory_space<vmem>>, %arg49: memref<2x32xf32, #tpu.memory_space<vmem>>) attributes {dimension_semantics = [], scalar_prefetch = 0 : i64, scratch_operands = 0 : i64, tpu.core_type = #tpu.core_type<tc>} {
    %c0 = arith.constant 0 : index
    %c0_0 = arith.constant 0 : index
    %0 = vector.load %arg0[%c0, %c0_0] : memref<8x14xf32, #tpu.memory_space<vmem>>, vector<8x14xf32>
    %c0_1 = arith.constant 0 : index
    %c0_2 = arith.constant 0 : index
    %1 = vector.load %arg10[%c0_1, %c0_2] : memref<14x32xf32, #tpu.memory_space<vmem>>, vector<14x32xf32>
    %cst = arith.constant dense<0.000000e+00> : vector<8x32xf32>
    %2 = tpu.matmul %0, %1, %cst {dimension_numbers = #tpu.dot_dimension_numbers<[1], [0], [0], [1], [0, 0, 1, 1], [], []>} : vector<8x14xf32>, vector<14x32xf32>, vector<8x32xf32> -> vector<8x32xf32>
    %c0_3 = arith.constant 0 : index
    %c0_4 = arith.constant 0 : index
    %3 = vector.load %arg11[%c0_3, %c0_4] : memref<1x32xf32, #tpu.memory_space<vmem>>, vector<1x32xf32>
    %4 = vector.broadcast %3 : vector<1x32xf32> to vector<8x32xf32>
    %5 = arith.addf %2, %4 : vector<8x32xf32>
    %cst_5 = arith.constant 0.000000e+00 : f32
    %6 = vector.broadcast %cst_5 : f32 to vector<8x32xf32>
    %7 = arith.maximumf %5, %6 : vector<8x32xf32>
    %8 = math.absf %5 : vector<8x32xf32>
    %cst_6 = arith.constant 0.000000e+00 : f32
    %9 = vector.broadcast %cst_6 : f32 to vector<8x32xf32>
    %10 = arith.subf %9, %8 : vector<8x32xf32>
    %11 = math.exp %10 : vector<8x32xf32>
    %12 = math.log1p %11 : vector<8x32xf32>
    %13 = arith.addf %7, %12 : vector<8x32xf32>
    %c0_7 = arith.constant 0 : index
    %c0_8 = arith.constant 0 : index
    %14 = vector.load %arg12[%c0_7, %c0_8] : memref<32x32xf32, #tpu.memory_space<vmem>>, vector<32x32xf32>
    %cst_9 = arith.constant dense<0.000000e+00> : vector<8x32xf32>
    %15 = tpu.matmul %13, %14, %cst_9 {dimension_numbers = #tpu.dot_dimension_numbers<[1], [0], [0], [1], [0, 0, 1, 1], [], []>} : vector<8x32xf32>, vector<32x32xf32>, vector<8x32xf32> -> vector<8x32xf32>
    %c0_10 = arith.constant 0 : index
    %c0_11 = arith.constant 0 : index
    %16 = vector.load %arg13[%c0_10, %c0_11] : memref<1x32xf32, #tpu.memory_space<vmem>>, vector<1x32xf32>
    %17 = vector.broadcast %16 : vector<1x32xf32> to vector<8x32xf32>
    %18 = arith.addf %15, %17 : vector<8x32xf32>
    %cst_12 = arith.constant 0.000000e+00 : f32
    %19 = vector.broadcast %cst_12 : f32 to vector<8x32xf32>
    %20 = arith.maximumf %18, %19 : vector<8x32xf32>
    %21 = math.absf %18 : vector<8x32xf32>
    %cst_13 = arith.constant 0.000000e+00 : f32
    %22 = vector.broadcast %cst_13 : f32 to vector<8x32xf32>
    %23 = arith.subf %22, %21 : vector<8x32xf32>
    %24 = math.exp %23 : vector<8x32xf32>
    %25 = math.log1p %24 : vector<8x32xf32>
    %26 = arith.addf %20, %25 : vector<8x32xf32>
    %c0_14 = arith.constant 0 : index
    %c0_15 = arith.constant 0 : index
    %27 = vector.load %arg1[%c0_14, %c0_15] : memref<8x10xf32, #tpu.memory_space<vmem>>, vector<8x10xf32>
    %c0_16 = arith.constant 0 : index
    %c0_17 = arith.constant 0 : index
    %28 = vector.load %arg14[%c0_16, %c0_17] : memref<10x32xf32, #tpu.memory_space<vmem>>, vector<10x32xf32>
    %cst_18 = arith.constant dense<0.000000e+00> : vector<8x32xf32>
    %29 = tpu.matmul %27, %28, %cst_18 {dimension_numbers = #tpu.dot_dimension_numbers<[1], [0], [0], [1], [0, 0, 1, 1], [], []>} : vector<8x10xf32>, vector<10x32xf32>, vector<8x32xf32> -> vector<8x32xf32>
    %c0_19 = arith.constant 0 : index
    %c0_20 = arith.constant 0 : index
    %30 = vector.load %arg15[%c0_19, %c0_20] : memref<1x32xf32, #tpu.memory_space<vmem>>, vector<1x32xf32>
    %31 = vector.broadcast %30 : vector<1x32xf32> to vector<8x32xf32>
    %32 = arith.addf %29, %31 : vector<8x32xf32>
    %cst_21 = arith.constant 0.000000e+00 : f32
    %33 = vector.broadcast %cst_21 : f32 to vector<8x32xf32>
    %34 = arith.maximumf %32, %33 : vector<8x32xf32>
    %35 = math.absf %32 : vector<8x32xf32>
    %cst_22 = arith.constant 0.000000e+00 : f32
    %36 = vector.broadcast %cst_22 : f32 to vector<8x32xf32>
    %37 = arith.subf %36, %35 : vector<8x32xf32>
    %38 = math.exp %37 : vector<8x32xf32>
    %39 = math.log1p %38 : vector<8x32xf32>
    %40 = arith.addf %34, %39 : vector<8x32xf32>
    %c0_23 = arith.constant 0 : index
    %c0_24 = arith.constant 0 : index
    %41 = vector.load %arg16[%c0_23, %c0_24] : memref<32x32xf32, #tpu.memory_space<vmem>>, vector<32x32xf32>
    %cst_25 = arith.constant dense<0.000000e+00> : vector<8x32xf32>
    %42 = tpu.matmul %40, %41, %cst_25 {dimension_numbers = #tpu.dot_dimension_numbers<[1], [0], [0], [1], [0, 0, 1, 1], [], []>} : vector<8x32xf32>, vector<32x32xf32>, vector<8x32xf32> -> vector<8x32xf32>
    %c0_26 = arith.constant 0 : index
    %c0_27 = arith.constant 0 : index
    %43 = vector.load %arg17[%c0_26, %c0_27] : memref<1x32xf32, #tpu.memory_space<vmem>>, vector<1x32xf32>
    %44 = vector.broadcast %43 : vector<1x32xf32> to vector<8x32xf32>
    %45 = arith.addf %42, %44 : vector<8x32xf32>
    %cst_28 = arith.constant 0.000000e+00 : f32
    %46 = vector.broadcast %cst_28 : f32 to vector<8x32xf32>
    %47 = arith.maximumf %45, %46 : vector<8x32xf32>
    %48 = math.absf %45 : vector<8x32xf32>
    %cst_29 = arith.constant 0.000000e+00 : f32
    %49 = vector.broadcast %cst_29 : f32 to vector<8x32xf32>
    %50 = arith.subf %49, %48 : vector<8x32xf32>
    %51 = math.exp %50 : vector<8x32xf32>
    %52 = math.log1p %51 : vector<8x32xf32>
    %53 = arith.addf %47, %52 : vector<8x32xf32>
    %c0_30 = arith.constant 0 : index
    %c0_31 = arith.constant 0 : index
    %54 = vector.load %arg2[%c0_30, %c0_31] : memref<2x6xf32, #tpu.memory_space<vmem>>, vector<2x6xf32>
    %c0_32 = arith.constant 0 : index
    %c0_33 = arith.constant 0 : index
    %55 = vector.load %arg18[%c0_32, %c0_33] : memref<6x32xf32, #tpu.memory_space<vmem>>, vector<6x32xf32>
    %cst_34 = arith.constant dense<0.000000e+00> : vector<2x32xf32>
    %56 = tpu.matmul %54, %55, %cst_34 {dimension_numbers = #tpu.dot_dimension_numbers<[1], [0], [0], [1], [0, 0, 1, 1], [], []>} : vector<2x6xf32>, vector<6x32xf32>, vector<2x32xf32> -> vector<2x32xf32>
    %c0_35 = arith.constant 0 : index
    %c0_36 = arith.constant 0 : index
    %57 = vector.load %arg19[%c0_35, %c0_36] : memref<1x32xf32, #tpu.memory_space<vmem>>, vector<1x32xf32>
    %58 = vector.broadcast %57 : vector<1x32xf32> to vector<2x32xf32>
    %59 = arith.addf %56, %58 : vector<2x32xf32>
    %cst_37 = arith.constant 0.000000e+00 : f32
    %60 = vector.broadcast %cst_37 : f32 to vector<2x32xf32>
    %61 = arith.maximumf %59, %60 : vector<2x32xf32>
    %62 = math.absf %59 : vector<2x32xf32>
    %cst_38 = arith.constant 0.000000e+00 : f32
    %63 = vector.broadcast %cst_38 : f32 to vector<2x32xf32>
    %64 = arith.subf %63, %62 : vector<2x32xf32>
    %65 = math.exp %64 : vector<2x32xf32>
    %66 = math.log1p %65 : vector<2x32xf32>
    %67 = arith.addf %61, %66 : vector<2x32xf32>
    %c0_39 = arith.constant 0 : index
    %c0_40 = arith.constant 0 : index
    %68 = vector.load %arg20[%c0_39, %c0_40] : memref<32x32xf32, #tpu.memory_space<vmem>>, vector<32x32xf32>
    %cst_41 = arith.constant dense<0.000000e+00> : vector<2x32xf32>
    %69 = tpu.matmul %67, %68, %cst_41 {dimension_numbers = #tpu.dot_dimension_numbers<[1], [0], [0], [1], [0, 0, 1, 1], [], []>} : vector<2x32xf32>, vector<32x32xf32>, vector<2x32xf32> -> vector<2x32xf32>
    %c0_42 = arith.constant 0 : index
    %c0_43 = arith.constant 0 : index
    %70 = vector.load %arg21[%c0_42, %c0_43] : memref<1x32xf32, #tpu.memory_space<vmem>>, vector<1x32xf32>
    %71 = vector.broadcast %70 : vector<1x32xf32> to vector<2x32xf32>
    %72 = arith.addf %69, %71 : vector<2x32xf32>
    %cst_44 = arith.constant 0.000000e+00 : f32
    %73 = vector.broadcast %cst_44 : f32 to vector<2x32xf32>
    %74 = arith.maximumf %72, %73 : vector<2x32xf32>
    %75 = math.absf %72 : vector<2x32xf32>
    %cst_45 = arith.constant 0.000000e+00 : f32
    %76 = vector.broadcast %cst_45 : f32 to vector<2x32xf32>
    %77 = arith.subf %76, %75 : vector<2x32xf32>
    %78 = math.exp %77 : vector<2x32xf32>
    %79 = math.log1p %78 : vector<2x32xf32>
    %80 = arith.addf %74, %79 : vector<2x32xf32>
    %c0_46 = arith.constant 0 : index
    %c0_47 = arith.constant 0 : index
    %81 = vector.load %arg3[%c0_46, %c0_47] : memref<8x8xf32, #tpu.memory_space<vmem>>, vector<8x8xf32>
    %cst_48 = arith.constant dense<0.000000e+00> : vector<8x32xf32>
    %82 = tpu.matmul %81, %53, %cst_48 {dimension_numbers = #tpu.dot_dimension_numbers<[1], [0], [0], [1], [0, 0, 1, 1], [], []>} : vector<8x8xf32>, vector<8x32xf32>, vector<8x32xf32> -> vector<8x32xf32>
    %c0_49 = arith.constant 0 : index
    %c0_50 = arith.constant 0 : index
    %83 = vector.load %arg4[%c0_49, %c0_50] : memref<8x2xf32, #tpu.memory_space<vmem>>, vector<8x2xf32>
    %cst_51 = arith.constant dense<0.000000e+00> : vector<8x32xf32>
    %84 = tpu.matmul %83, %80, %cst_51 {dimension_numbers = #tpu.dot_dimension_numbers<[1], [0], [0], [1], [0, 0, 1, 1], [], []>} : vector<8x2xf32>, vector<2x32xf32>, vector<8x32xf32> -> vector<8x32xf32>
    %c0_52 = arith.constant 0 : index
    %c0_53 = arith.constant 0 : index
    %85 = vector.load %arg22[%c0_52, %c0_53] : memref<32x32xf32, #tpu.memory_space<vmem>>, vector<32x32xf32>
    %cst_54 = arith.constant dense<0.000000e+00> : vector<8x32xf32>
    %86 = tpu.matmul %26, %85, %cst_54 {dimension_numbers = #tpu.dot_dimension_numbers<[1], [0], [0], [1], [0, 0, 1, 1], [], []>} : vector<8x32xf32>, vector<32x32xf32>, vector<8x32xf32> -> vector<8x32xf32>
    %c0_55 = arith.constant 0 : index
    %c0_56 = arith.constant 0 : index
    %87 = vector.load %arg23[%c0_55, %c0_56] : memref<32x32xf32, #tpu.memory_space<vmem>>, vector<32x32xf32>
    %cst_57 = arith.constant dense<0.000000e+00> : vector<8x32xf32>
    %88 = tpu.matmul %82, %87, %cst_57 {dimension_numbers = #tpu.dot_dimension_numbers<[1], [0], [0], [1], [0, 0, 1, 1], [], []>} : vector<8x32xf32>, vector<32x32xf32>, vector<8x32xf32> -> vector<8x32xf32>
    %89 = arith.addf %86, %88 : vector<8x32xf32>
    %c0_58 = arith.constant 0 : index
    %c0_59 = arith.constant 0 : index
    %90 = vector.load %arg24[%c0_58, %c0_59] : memref<32x32xf32, #tpu.memory_space<vmem>>, vector<32x32xf32>
    %cst_60 = arith.constant dense<0.000000e+00> : vector<8x32xf32>
    %91 = tpu.matmul %84, %90, %cst_60 {dimension_numbers = #tpu.dot_dimension_numbers<[1], [0], [0], [1], [0, 0, 1, 1], [], []>} : vector<8x32xf32>, vector<32x32xf32>, vector<8x32xf32> -> vector<8x32xf32>
    %92 = arith.addf %89, %91 : vector<8x32xf32>
    %c0_61 = arith.constant 0 : index
    %c0_62 = arith.constant 0 : index
    %93 = vector.load %arg25[%c0_61, %c0_62] : memref<1x32xf32, #tpu.memory_space<vmem>>, vector<1x32xf32>
    %94 = vector.broadcast %93 : vector<1x32xf32> to vector<8x32xf32>
    %95 = arith.addf %92, %94 : vector<8x32xf32>
    %cst_63 = arith.constant 0.000000e+00 : f32
    %96 = vector.broadcast %cst_63 : f32 to vector<8x32xf32>
    %97 = arith.maximumf %95, %96 : vector<8x32xf32>
    %98 = math.absf %95 : vector<8x32xf32>
    %cst_64 = arith.constant 0.000000e+00 : f32
    %99 = vector.broadcast %cst_64 : f32 to vector<8x32xf32>
    %100 = arith.subf %99, %98 : vector<8x32xf32>
    %101 = math.exp %100 : vector<8x32xf32>
    %102 = math.log1p %101 : vector<8x32xf32>
    %103 = arith.addf %97, %102 : vector<8x32xf32>
    %c0_65 = arith.constant 0 : index
    %c0_66 = arith.constant 0 : index
    %104 = vector.load %arg26[%c0_65, %c0_66] : memref<32x32xf32, #tpu.memory_space<vmem>>, vector<32x32xf32>
    %cst_67 = arith.constant dense<0.000000e+00> : vector<8x32xf32>
    %105 = tpu.matmul %103, %104, %cst_67 {dimension_numbers = #tpu.dot_dimension_numbers<[1], [0], [0], [1], [0, 0, 1, 1], [], []>} : vector<8x32xf32>, vector<32x32xf32>, vector<8x32xf32> -> vector<8x32xf32>
    %c0_68 = arith.constant 0 : index
    %c0_69 = arith.constant 0 : index
    %106 = vector.load %arg27[%c0_68, %c0_69] : memref<1x32xf32, #tpu.memory_space<vmem>>, vector<1x32xf32>
    %107 = vector.broadcast %106 : vector<1x32xf32> to vector<8x32xf32>
    %108 = arith.addf %105, %107 : vector<8x32xf32>
    %cst_70 = arith.constant 0.000000e+00 : f32
    %109 = vector.broadcast %cst_70 : f32 to vector<8x32xf32>
    %110 = arith.maximumf %108, %109 : vector<8x32xf32>
    %111 = math.absf %108 : vector<8x32xf32>
    %cst_71 = arith.constant 0.000000e+00 : f32
    %112 = vector.broadcast %cst_71 : f32 to vector<8x32xf32>
    %113 = arith.subf %112, %111 : vector<8x32xf32>
    %114 = math.exp %113 : vector<8x32xf32>
    %115 = math.log1p %114 : vector<8x32xf32>
    %116 = arith.addf %110, %115 : vector<8x32xf32>
    %c0_72 = arith.constant 0 : index
    %c0_73 = arith.constant 0 : index
    %117 = vector.load %arg28[%c0_72, %c0_73] : memref<32x32xf32, #tpu.memory_space<vmem>>, vector<32x32xf32>
    %cst_74 = arith.constant dense<0.000000e+00> : vector<8x32xf32>
    %118 = tpu.matmul %116, %117, %cst_74 {dimension_numbers = #tpu.dot_dimension_numbers<[1], [0], [0], [1], [0, 0, 1, 1], [], []>} : vector<8x32xf32>, vector<32x32xf32>, vector<8x32xf32> -> vector<8x32xf32>
    %c0_75 = arith.constant 0 : index
    %c0_76 = arith.constant 0 : index
    %119 = vector.load %arg29[%c0_75, %c0_76] : memref<1x32xf32, #tpu.memory_space<vmem>>, vector<1x32xf32>
    %120 = vector.broadcast %119 : vector<1x32xf32> to vector<8x32xf32>
    %121 = arith.addf %118, %120 : vector<8x32xf32>
    %c0_77 = arith.constant 0 : index
    %c0_78 = arith.constant 0 : index
    %122 = vector.load %arg5[%c0_77, %c0_78] : memref<8x8xf32, #tpu.memory_space<vmem>>, vector<8x8xf32>
    %cst_79 = arith.constant dense<0.000000e+00> : vector<8x32xf32>
    %123 = tpu.matmul %122, %121, %cst_79 {dimension_numbers = #tpu.dot_dimension_numbers<[1], [0], [0], [1], [0, 0, 1, 1], [], []>} : vector<8x8xf32>, vector<8x32xf32>, vector<8x32xf32> -> vector<8x32xf32>
    %c0_80 = arith.constant 0 : index
    %c0_81 = arith.constant 0 : index
    %124 = vector.load %arg6[%c0_80, %c0_81] : memref<8x8xf32, #tpu.memory_space<vmem>>, vector<8x8xf32>
    %cst_82 = arith.constant dense<0.000000e+00> : vector<8x32xf32>
    %125 = tpu.matmul %124, %121, %cst_82 {dimension_numbers = #tpu.dot_dimension_numbers<[1], [0], [0], [1], [0, 0, 1, 1], [], []>} : vector<8x8xf32>, vector<8x32xf32>, vector<8x32xf32> -> vector<8x32xf32>
    %c0_83 = arith.constant 0 : index
    %c0_84 = arith.constant 0 : index
    %126 = vector.load %arg7[%c0_83, %c0_84] : memref<8x2xf32, #tpu.memory_space<vmem>>, vector<8x2xf32>
    %cst_85 = arith.constant dense<0.000000e+00> : vector<8x32xf32>
    %127 = tpu.matmul %126, %80, %cst_85 {dimension_numbers = #tpu.dot_dimension_numbers<[1], [0], [0], [1], [0, 0, 1, 1], [], []>} : vector<8x2xf32>, vector<2x32xf32>, vector<8x32xf32> -> vector<8x32xf32>
    %c0_86 = arith.constant 0 : index
    %c0_87 = arith.constant 0 : index
    %128 = vector.load %arg30[%c0_86, %c0_87] : memref<32x32xf32, #tpu.memory_space<vmem>>, vector<32x32xf32>
    %cst_88 = arith.constant dense<0.000000e+00> : vector<8x32xf32>
    %129 = tpu.matmul %53, %128, %cst_88 {dimension_numbers = #tpu.dot_dimension_numbers<[1], [0], [0], [1], [0, 0, 1, 1], [], []>} : vector<8x32xf32>, vector<32x32xf32>, vector<8x32xf32> -> vector<8x32xf32>
    %c0_89 = arith.constant 0 : index
    %c0_90 = arith.constant 0 : index
    %130 = vector.load %arg31[%c0_89, %c0_90] : memref<32x32xf32, #tpu.memory_space<vmem>>, vector<32x32xf32>
    %cst_91 = arith.constant dense<0.000000e+00> : vector<8x32xf32>
    %131 = tpu.matmul %123, %130, %cst_91 {dimension_numbers = #tpu.dot_dimension_numbers<[1], [0], [0], [1], [0, 0, 1, 1], [], []>} : vector<8x32xf32>, vector<32x32xf32>, vector<8x32xf32> -> vector<8x32xf32>
    %132 = arith.addf %129, %131 : vector<8x32xf32>
    %c0_92 = arith.constant 0 : index
    %c0_93 = arith.constant 0 : index
    %133 = vector.load %arg32[%c0_92, %c0_93] : memref<32x32xf32, #tpu.memory_space<vmem>>, vector<32x32xf32>
    %cst_94 = arith.constant dense<0.000000e+00> : vector<8x32xf32>
    %134 = tpu.matmul %125, %133, %cst_94 {dimension_numbers = #tpu.dot_dimension_numbers<[1], [0], [0], [1], [0, 0, 1, 1], [], []>} : vector<8x32xf32>, vector<32x32xf32>, vector<8x32xf32> -> vector<8x32xf32>
    %135 = arith.addf %132, %134 : vector<8x32xf32>
    %c0_95 = arith.constant 0 : index
    %c0_96 = arith.constant 0 : index
    %136 = vector.load %arg33[%c0_95, %c0_96] : memref<32x32xf32, #tpu.memory_space<vmem>>, vector<32x32xf32>
    %cst_97 = arith.constant dense<0.000000e+00> : vector<8x32xf32>
    %137 = tpu.matmul %127, %136, %cst_97 {dimension_numbers = #tpu.dot_dimension_numbers<[1], [0], [0], [1], [0, 0, 1, 1], [], []>} : vector<8x32xf32>, vector<32x32xf32>, vector<8x32xf32> -> vector<8x32xf32>
    %138 = arith.addf %135, %137 : vector<8x32xf32>
    %c0_98 = arith.constant 0 : index
    %c0_99 = arith.constant 0 : index
    %139 = vector.load %arg34[%c0_98, %c0_99] : memref<1x32xf32, #tpu.memory_space<vmem>>, vector<1x32xf32>
    %140 = vector.broadcast %139 : vector<1x32xf32> to vector<8x32xf32>
    %141 = arith.addf %138, %140 : vector<8x32xf32>
    %cst_100 = arith.constant 0.000000e+00 : f32
    %142 = vector.broadcast %cst_100 : f32 to vector<8x32xf32>
    %143 = arith.maximumf %141, %142 : vector<8x32xf32>
    %144 = math.absf %141 : vector<8x32xf32>
    %cst_101 = arith.constant 0.000000e+00 : f32
    %145 = vector.broadcast %cst_101 : f32 to vector<8x32xf32>
    %146 = arith.subf %145, %144 : vector<8x32xf32>
    %147 = math.exp %146 : vector<8x32xf32>
    %148 = math.log1p %147 : vector<8x32xf32>
    %149 = arith.addf %143, %148 : vector<8x32xf32>
    %c0_102 = arith.constant 0 : index
    %c0_103 = arith.constant 0 : index
    %150 = vector.load %arg35[%c0_102, %c0_103] : memref<32x32xf32, #tpu.memory_space<vmem>>, vector<32x32xf32>
    %cst_104 = arith.constant dense<0.000000e+00> : vector<8x32xf32>
    %151 = tpu.matmul %149, %150, %cst_104 {dimension_numbers = #tpu.dot_dimension_numbers<[1], [0], [0], [1], [0, 0, 1, 1], [], []>} : vector<8x32xf32>, vector<32x32xf32>, vector<8x32xf32> -> vector<8x32xf32>
    %c0_105 = arith.constant 0 : index
    %c0_106 = arith.constant 0 : index
    %152 = vector.load %arg36[%c0_105, %c0_106] : memref<1x32xf32, #tpu.memory_space<vmem>>, vector<1x32xf32>
    %153 = vector.broadcast %152 : vector<1x32xf32> to vector<8x32xf32>
    %154 = arith.addf %151, %153 : vector<8x32xf32>
    %cst_107 = arith.constant 0.000000e+00 : f32
    %155 = vector.broadcast %cst_107 : f32 to vector<8x32xf32>
    %156 = arith.maximumf %154, %155 : vector<8x32xf32>
    %157 = math.absf %154 : vector<8x32xf32>
    %cst_108 = arith.constant 0.000000e+00 : f32
    %158 = vector.broadcast %cst_108 : f32 to vector<8x32xf32>
    %159 = arith.subf %158, %157 : vector<8x32xf32>
    %160 = math.exp %159 : vector<8x32xf32>
    %161 = math.log1p %160 : vector<8x32xf32>
    %162 = arith.addf %156, %161 : vector<8x32xf32>
    %c0_109 = arith.constant 0 : index
    %c0_110 = arith.constant 0 : index
    %163 = vector.load %arg37[%c0_109, %c0_110] : memref<32x32xf32, #tpu.memory_space<vmem>>, vector<32x32xf32>
    %cst_111 = arith.constant dense<0.000000e+00> : vector<8x32xf32>
    %164 = tpu.matmul %162, %163, %cst_111 {dimension_numbers = #tpu.dot_dimension_numbers<[1], [0], [0], [1], [0, 0, 1, 1], [], []>} : vector<8x32xf32>, vector<32x32xf32>, vector<8x32xf32> -> vector<8x32xf32>
    %c0_112 = arith.constant 0 : index
    %c0_113 = arith.constant 0 : index
    %165 = vector.load %arg38[%c0_112, %c0_113] : memref<1x32xf32, #tpu.memory_space<vmem>>, vector<1x32xf32>
    %166 = vector.broadcast %165 : vector<1x32xf32> to vector<8x32xf32>
    %167 = arith.addf %164, %166 : vector<8x32xf32>
    %c0_114 = arith.constant 0 : index
    %c0_115 = arith.constant 0 : index
    %168 = vector.load %arg8[%c0_114, %c0_115] : memref<2x8xf32, #tpu.memory_space<vmem>>, vector<2x8xf32>
    %cst_116 = arith.constant dense<0.000000e+00> : vector<2x32xf32>
    %169 = tpu.matmul %168, %121, %cst_116 {dimension_numbers = #tpu.dot_dimension_numbers<[1], [0], [0], [1], [0, 0, 1, 1], [], []>} : vector<2x8xf32>, vector<8x32xf32>, vector<2x32xf32> -> vector<2x32xf32>
    %c0_117 = arith.constant 0 : index
    %c0_118 = arith.constant 0 : index
    %170 = vector.load %arg9[%c0_117, %c0_118] : memref<2x8xf32, #tpu.memory_space<vmem>>, vector<2x8xf32>
    %cst_119 = arith.constant dense<0.000000e+00> : vector<2x32xf32>
    %171 = tpu.matmul %170, %167, %cst_119 {dimension_numbers = #tpu.dot_dimension_numbers<[1], [0], [0], [1], [0, 0, 1, 1], [], []>} : vector<2x8xf32>, vector<8x32xf32>, vector<2x32xf32> -> vector<2x32xf32>
    %c0_120 = arith.constant 0 : index
    %c0_121 = arith.constant 0 : index
    %172 = vector.load %arg39[%c0_120, %c0_121] : memref<32x32xf32, #tpu.memory_space<vmem>>, vector<32x32xf32>
    %cst_122 = arith.constant dense<0.000000e+00> : vector<2x32xf32>
    %173 = tpu.matmul %80, %172, %cst_122 {dimension_numbers = #tpu.dot_dimension_numbers<[1], [0], [0], [1], [0, 0, 1, 1], [], []>} : vector<2x32xf32>, vector<32x32xf32>, vector<2x32xf32> -> vector<2x32xf32>
    %c0_123 = arith.constant 0 : index
    %c0_124 = arith.constant 0 : index
    %174 = vector.load %arg40[%c0_123, %c0_124] : memref<32x32xf32, #tpu.memory_space<vmem>>, vector<32x32xf32>
    %cst_125 = arith.constant dense<0.000000e+00> : vector<2x32xf32>
    %175 = tpu.matmul %169, %174, %cst_125 {dimension_numbers = #tpu.dot_dimension_numbers<[1], [0], [0], [1], [0, 0, 1, 1], [], []>} : vector<2x32xf32>, vector<32x32xf32>, vector<2x32xf32> -> vector<2x32xf32>
    %176 = arith.addf %173, %175 : vector<2x32xf32>
    %c0_126 = arith.constant 0 : index
    %c0_127 = arith.constant 0 : index
    %177 = vector.load %arg41[%c0_126, %c0_127] : memref<32x32xf32, #tpu.memory_space<vmem>>, vector<32x32xf32>
    %cst_128 = arith.constant dense<0.000000e+00> : vector<2x32xf32>
    %178 = tpu.matmul %171, %177, %cst_128 {dimension_numbers = #tpu.dot_dimension_numbers<[1], [0], [0], [1], [0, 0, 1, 1], [], []>} : vector<2x32xf32>, vector<32x32xf32>, vector<2x32xf32> -> vector<2x32xf32>
    %179 = arith.addf %176, %178 : vector<2x32xf32>
    %c0_129 = arith.constant 0 : index
    %c0_130 = arith.constant 0 : index
    %180 = vector.load %arg42[%c0_129, %c0_130] : memref<1x32xf32, #tpu.memory_space<vmem>>, vector<1x32xf32>
    %181 = vector.broadcast %180 : vector<1x32xf32> to vector<2x32xf32>
    %182 = arith.addf %179, %181 : vector<2x32xf32>
    %cst_131 = arith.constant 0.000000e+00 : f32
    %183 = vector.broadcast %cst_131 : f32 to vector<2x32xf32>
    %184 = arith.maximumf %182, %183 : vector<2x32xf32>
    %185 = math.absf %182 : vector<2x32xf32>
    %cst_132 = arith.constant 0.000000e+00 : f32
    %186 = vector.broadcast %cst_132 : f32 to vector<2x32xf32>
    %187 = arith.subf %186, %185 : vector<2x32xf32>
    %188 = math.exp %187 : vector<2x32xf32>
    %189 = math.log1p %188 : vector<2x32xf32>
    %190 = arith.addf %184, %189 : vector<2x32xf32>
    %c0_133 = arith.constant 0 : index
    %c0_134 = arith.constant 0 : index
    %191 = vector.load %arg43[%c0_133, %c0_134] : memref<32x32xf32, #tpu.memory_space<vmem>>, vector<32x32xf32>
    %cst_135 = arith.constant dense<0.000000e+00> : vector<2x32xf32>
    %192 = tpu.matmul %190, %191, %cst_135 {dimension_numbers = #tpu.dot_dimension_numbers<[1], [0], [0], [1], [0, 0, 1, 1], [], []>} : vector<2x32xf32>, vector<32x32xf32>, vector<2x32xf32> -> vector<2x32xf32>
    %c0_136 = arith.constant 0 : index
    %c0_137 = arith.constant 0 : index
    %193 = vector.load %arg44[%c0_136, %c0_137] : memref<1x32xf32, #tpu.memory_space<vmem>>, vector<1x32xf32>
    %194 = vector.broadcast %193 : vector<1x32xf32> to vector<2x32xf32>
    %195 = arith.addf %192, %194 : vector<2x32xf32>
    %cst_138 = arith.constant 0.000000e+00 : f32
    %196 = vector.broadcast %cst_138 : f32 to vector<2x32xf32>
    %197 = arith.maximumf %195, %196 : vector<2x32xf32>
    %198 = math.absf %195 : vector<2x32xf32>
    %cst_139 = arith.constant 0.000000e+00 : f32
    %199 = vector.broadcast %cst_139 : f32 to vector<2x32xf32>
    %200 = arith.subf %199, %198 : vector<2x32xf32>
    %201 = math.exp %200 : vector<2x32xf32>
    %202 = math.log1p %201 : vector<2x32xf32>
    %203 = arith.addf %197, %202 : vector<2x32xf32>
    %c0_140 = arith.constant 0 : index
    %c0_141 = arith.constant 0 : index
    %204 = vector.load %arg45[%c0_140, %c0_141] : memref<32x32xf32, #tpu.memory_space<vmem>>, vector<32x32xf32>
    %cst_142 = arith.constant dense<0.000000e+00> : vector<2x32xf32>
    %205 = tpu.matmul %203, %204, %cst_142 {dimension_numbers = #tpu.dot_dimension_numbers<[1], [0], [0], [1], [0, 0, 1, 1], [], []>} : vector<2x32xf32>, vector<32x32xf32>, vector<2x32xf32> -> vector<2x32xf32>
    %c0_143 = arith.constant 0 : index
    %c0_144 = arith.constant 0 : index
    %206 = vector.load %arg46[%c0_143, %c0_144] : memref<1x32xf32, #tpu.memory_space<vmem>>, vector<1x32xf32>
    %207 = vector.broadcast %206 : vector<1x32xf32> to vector<2x32xf32>
    %208 = arith.addf %205, %207 : vector<2x32xf32>
    %c0_145 = arith.constant 0 : index
    %c0_146 = arith.constant 0 : index
    %209 = vector.load %arg47[%c0_145, %c0_146] : memref<8x32xf32, #tpu.memory_space<vmem>>, vector<8x32xf32>
    tpu.vector_store %arg47[%c0_145, %c0_146], %121 {strides = array<i32>} : memref<8x32xf32, #tpu.memory_space<vmem>>, vector<8x32xf32>,
    %c0_147 = arith.constant 0 : index
    %c0_148 = arith.constant 0 : index
    %210 = vector.load %arg48[%c0_147, %c0_148] : memref<8x32xf32, #tpu.memory_space<vmem>>, vector<8x32xf32>
    tpu.vector_store %arg48[%c0_147, %c0_148], %167 {strides = array<i32>} : memref<8x32xf32, #tpu.memory_space<vmem>>, vector<8x32xf32>,
    %c0_149 = arith.constant 0 : index
    %c0_150 = arith.constant 0 : index
    %211 = vector.load %arg49[%c0_149, %c0_150] : memref<2x32xf32, #tpu.memory_space<vmem>>, vector<2x32xf32>
    tpu.vector_store %arg49[%c0_149, %c0_150], %208 {strides = array<i32>} : memref<2x32xf32, #tpu.memory_space<vmem>>, vector<2x32xf32>,
    return
  }
}

</mosaic_0001>

<bundles_post_ra>
// kernel: tpu_custom_call.1
= control target key start
LH: loop header
LB: loop body
LE: loop exit
PB: predicated region body
PF: predicated region fallthrough
CT: control target
= control target key end

     0   :  { %s4811_s6 = smov 1   ;;  %s4812_s10 = smov 2   ;;  %s5476_s0 = inlined_call_operand.smem [shape: u32[50], index: -1, kind: input, shape index: {}] }
   0x1   :  { %s4915_s5 = sld [smem:[%s5476_s0]]   ;;  %s4813_s14 = smov 3  }
   0x2   :  { %s4920_s9 = sld [smem:[%s5476_s0 + %s4811_s6]]   ;;  %s4814_s18 = smov 4  }
   0x3   :  { %s4925_s13 = sld [smem:[%s5476_s0 + %s4812_s10]]   ;;  %s4815_s22 = smov 5  }
   0x4   :  { %s4930_s17 = sld [smem:[%s5476_s0 + %s4813_s14]]   ;;  %s4816_s26 = smov 6  }
   0x5   :  { %s4935_s21 = sld [smem:[%s5476_s0 + %s4814_s18]]   ;;  %s4817_s30 = smov 7  }
   0x6   :  { %s4940_s25 = sld [smem:[%s5476_s0 + %s4815_s22]]   ;;  %s4818_s4 = smov 8  }
   0x7   :  { %5480 = sst [smem:[#allocation91_spill]] %s4915_s5  ;;  %s4819_s10 = smov 9  }
   0x8   :  { %s4945_s29 = sld [smem:[%s5476_s0 + %s4816_s26]]   ;;  %s4820_s15 = smov 10  }
   0x9   :  { %5481 = sst [smem:[#allocation92_spill]] %s4925_s13  ;;  %s4821_s20 = smov 11  }
   0xa   :  { %s4950_s3 = sld [smem:[%s5476_s0 + %s4817_s30]]   ;;  %s4822_s26 = smov 12  }
   0xb   :  { %5482 = sst [smem:[#allocation93_spill]] %s4935_s21  ;;  %s4823_s1 = smov 13  }
   0xc   :  { %5483 = sst [smem:[#allocation94_spill]] %s4940_s25  ;;  %s4824_s7 = smov 14  }
   0xd   :  { %s4955_s8 = sld [smem:[%s5476_s0 + %s4818_s4]]   ;;  %s4826_s22 = smov 16  }
   0xe   :  { %s4960_s14 = sld [smem:[%s5476_s0 + %s4819_s10]]   ;;  %s4827_s28 = smov 17  }
   0xf   :  { %s4965_s19 = sld [smem:[%s5476_s0 + %s4820_s15]]   ;;  %s4825_s15 = smov 15  }
  0x10   :  { %5484 = sst [smem:[#allocation95_spill]] %s4950_s3 }
  0x11   :  { %s4970_s24 = sld [smem:[%s5476_s0 + %s4821_s20]]  }
  0x12   :  { %s4975_s30 = sld [smem:[%s5476_s0 + %s4822_s26]]  }
  0x13   :  { %5485 = sst [smem:[#allocation96_spill]] %s4955_s8 }
  0x14   :  { %s4980_s6 = sld [smem:[%s5476_s0 + %s4823_s1]]  }
  0x15   :  { %5486 = sst [smem:[#allocation97_spill]] %s4965_s19 }
  0x16   :  { %s4985_s12 = sld [smem:[%s5476_s0 + %s4824_s7]]   ;;  %s4828_s7 = smov 18  }
  0x17   :  { %s4990_s20 = sld [smem:[%s5476_s0 + %s4825_s15]]   ;;  %s4829_s15 = smov 19  }
  0x18   :  { %5487 = sst [smem:[#allocation98_spill]] %s4975_s30 }
  0x19   :  { %s4995_s27 = sld [smem:[%s5476_s0 + %s4826_s22]]   ;;  %s4830_s22 = smov 20  }
  0x1a   :  { %5488 = sst [smem:[#allocation99_spill]] %s4980_s6 }
  0x1b   :  { %s5000_s4 = sld [smem:[%s5476_s0 + %s4827_s28]]   ;;  %s4831_s28 = smov 21  }
  0x1c   :  { %s5005_s3 = sld [smem:[%s5476_s0 + %s4828_s7]]   ;;  %s4832_s7 = smov 22  }
  0x1d   :  { %5489 = sst [smem:[#allocation100_spill]] %s4990_s20 }
  0x1e   :  { %s5010_s21 = sld [smem:[%s5476_s0 + %s4829_s15]]   ;;  %s4833_s15 = smov 23  }
  0x1f   :  { %s5015_s30 = sld [smem:[%s5476_s0 + %s4830_s22]]   ;;  %s4834_s22 = smov 24  }
  0x20   :  { %s5025_s20 = sld [smem:[%s5476_s0 + %s4832_s7]]   ;;  %s4836_s7 = smov 26  }
  0x21   :  { %5490 = sst [smem:[#allocation101_spill]] %s5000_s4 }
  0x22   :  { %s5020_s4 = sld [smem:[%s5476_s0 + %s4831_s28]]   ;;  %s4835_s28 = smov 25  }
  0x23   :  { %s5035_s6 = sld [smem:[%s5476_s0 + %s4834_s22]]   ;;  %s4838_s22 = smov 28  }
  0x24   :  { %5491 = sst [smem:[#allocation102_spill]] %s5010_s21 }
  0x25   :  { %s5030_s21 = sld [smem:[%s5476_s0 + %s4833_s15]]   ;;  %s4837_s15 = smov 27  }
  0x26   :  { %s5045_s19 = sld [smem:[%s5476_s0 + %s4836_s7]]   ;;  %s4840_s7 = smov 30  }
  0x27   :  { %s5055_s8 = sld [smem:[%s5476_s0 + %s4838_s22]]   ;;  %s4842_s22 = smov 32  }
  0x28   :  { %5492 = sst [smem:[#allocation103_spill]] %s5020_s4 }
  0x29   :  { %s5040_s4 = sld [smem:[%s5476_s0 + %s4835_s28]]   ;;  %s4839_s28 = smov 29  }
  0x2b   :  { %5493 = sst [smem:[#allocation104_spill]] %s5030_s21 }
  0x2c   :  { %5495 = sst [smem:[#allocation106_spill]] %s5045_s19 }
  0x2d   :  { %s5050_s21 = sld [smem:[%s5476_s0 + %s4837_s15]]   ;;  %s4841_s15 = smov 31  }
  0x2e   :  { %5496 = sst [smem:[#allocation107_spill]] %s5055_s8 }
  0x2f   :  { %5494 = sst [smem:[#allocation105_spill]] %s5040_s4 }
  0x30   :  { %s5060_s4 = sld [smem:[%s5476_s0 + %s4839_s28]]   ;;  %s4843_s28 = smov 33  }
  0x31   :  { %s5065_s19 = sld [smem:[%s5476_s0 + %s4840_s7]]   ;;  %s4844_s7 = smov 34  }
  0x32   :  { %s5070_s25 = sld [smem:[%s5476_s0 + %s4841_s15]]   ;;  %s4845_s15 = smov 35  }
  0x33   :  { %s5075_s8 = sld [smem:[%s5476_s0 + %s4842_s22]]   ;;  %s4846_s22 = smov 36  }
  0x34   :  { %s5080_s13 = sld [smem:[%s5476_s0 + %s4843_s28]]   ;;  %s4847_s28 = smov 37  }
  0x35   :  { %s5090_s5 = sld [smem:[%s5476_s0 + %s4845_s15]]   ;;  %s4849_s15 = smov 39  }
  0x37   :  { %5497 = sst [smem:[#allocation108_spill]] %s5065_s19 }
  0x38   :  { %s5085_s19 = sld [smem:[%s5476_s0 + %s4844_s7]]   ;;  %s4848_s7 = smov 38  }
  0x39   :  { %5498 = sst [smem:[#allocation109_spill]] %s5075_s8 }
  0x3a   :  { %5499 = sst [smem:[#allocation110_spill]] %s5080_s13 }
  0x3b   :  { %5501 = sst [smem:[#allocation112_spill]] %s5090_s5 }
  0x3c   :  { %s5095_s8 = sld [smem:[%s5476_s0 + %s4846_s22]]   ;;  %s4850_s22 = smov 40  }
  0x3d   :  { %s5100_s13 = sld [smem:[%s5476_s0 + %s4847_s28]]   ;;  %s4851_s28 = smov 41  }
  0x3e   :  { %5500 = sst [smem:[#allocation111_spill]] %s5085_s19 }
  0x3f   :  { %s5105_s19 = sld [smem:[%s5476_s0 + %s4848_s7]]   ;;  %s4852_s7 = smov 42  }
  0x40   :  { %s5110_s5 = sld [smem:[%s5476_s0 + %s4849_s15]]   ;;  %s4853_s15 = smov 43  }
  0x42   :  { %5502 = sst [smem:[#allocation113_spill]] %s5095_s8 }
  0x43   :  { %5503 = sst [smem:[#allocation114_spill]] %s5100_s13 }
  0x44   :  { %s5115_s8 = sld [smem:[%s5476_s0 + %s4850_s22]]   ;;  %s4854_s22 = smov 44  }
  0x45   :  { %5504 = sst [smem:[#allocation115_spill]] %s5105_s19 }
  0x46   :  { %5505 = sst [smem:[#allocation116_spill]] %s5110_s5 }
  0x47   :  { %s5120_s13 = sld [smem:[%s5476_s0 + %s4851_s28]]   ;;  %s4855_s28 = smov 45  }
  0x48   :  { %s5125_s19 = sld [smem:[%s5476_s0 + %s4852_s7]]   ;;  %s4856_s7 = smov 46  }
  0x49   :  { %s5130_s5 = sld [smem:[%s5476_s0 + %s4853_s15]]   ;;  %s4857_s15 = smov 47  }
  0x4a   :  { %5506 = sst [smem:[#allocation117_spill]] %s5115_s8 }
  0x4b   :  { %s5135_s8 = sld [smem:[%s5476_s0 + %s4854_s22]]   ;;  %s4858_s22 = smov 48  }
  0x4d   :  { %5507 = sst [smem:[#allocation118_spill]] %s5120_s13 }
  0x4e   :  { %5508 = sst [smem:[#allocation119_spill]] %s5125_s19 }
  0x4f   :  { %5509 = sst [smem:[#allocation120_spill]] %s5130_s5 }
  0x50   :  { %s5140_s13 = sld [smem:[%s5476_s0 + %s4855_s28]]   ;;  %s4859_s28 = smov 49  }
  0x51   :  { %5510 = sst [smem:[#allocation121_spill]] %s5135_s8 }
  0x52   :  { %s5145_s19 = sld [smem:[%s5476_s0 + %s4856_s7]]  }
  0x53   :  { %s5150_s5 = sld [smem:[%s5476_s0 + %s4857_s15]]  }
  0x54   :  { %s5155_s8 = sld [smem:[%s5476_s0 + %s4858_s22]]  }
  0x56   :  { %5511 = sst [smem:[#allocation122_spill]] %s5140_s13 }
  0x57   :  { %s5160_s13 = sld [smem:[%s5476_s0 + %s4859_s28]]  }
  0x58   :  { %105 = vsyncpa [#allocation3], 0 }
  0x59   :  { %106 = vsyncpa [#allocation6], 0 }
  0x5a   :  { %107 = vsyncpa [#allocation9], 0 }
  0x5b   :  { %108 = vsyncpa [#allocation12], 0 }
  0x5c   :  { %109 = vsyncpa [#allocation15], 0 }
  0x5d   :  { %110 = vsyncpa [#allocation18], 0 }
  0x5e   :  { %111 = vsyncpa [#allocation21], 0 }
  0x5f   :  { %112 = vsyncpa [#allocation24], 0 }
  0x60   :  { %113 = vsyncpa [#allocation27], 0 }
  0x61   :  { %114 = vsyncpa [#allocation30], 0 }
  0x62   :  { %115 = vsyncpa [#allocation33], 0 }
  0x63   :  { %116 = vsyncpa [#allocation36], 0 }
  0x64   :  { %117 = vsyncpa [#allocation39], 0 }
  0x65   :  { %118 = vsyncpa [#allocation42], 0 }
  0x66   :  { %119 = vsyncpa [#allocation45], 0 }
  0x67   :  { %120 = vsyncpa [#allocation48], 0 }
  0x68   :  { %121 = vsyncpa [#allocation51], 0 }
  0x69   :  { %122 = vsyncpa [#allocation54], 0 }
  0x6a   :  { %123 = vsyncpa [#allocation57], 0 }
  0x6b   :  { %124 = vsyncpa [#allocation60], 0 }
  0x6c   :  { %125 = vsyncpa [#allocation63], 0 }
  0x6d   :  { %126 = vsyncpa [#allocation4], 0 }
  0x6e   :  { %127 = vsyncpa [#allocation66], 0  ;;  %s4860_s0 = smov [#allocation5]   ;;  %s4861_s10 = smov [#allocation8]  }
  0x6f   :  { %s144_s7 = sshll.u32 %s4860_s0, 4  ;;  %s164_s11 = sshll.u32 %s4861_s10, 4  ;;  %s145_s7 = int_to_ptr.vmem [resolvable:$true] %s144_s7  ;;  %s165_s11 = int_to_ptr.vmem [resolvable:$true] %s164_s11 }
  0x70   :  { %s3913_s15 = scalar_lea.vmem %s145_s7, 128  ;;  %p3918_p1 = scmp.lt.s32.totalorder %s145_s7, %s145_s7 }
  0x71   :  { %p3914_p0 = scmp.ne.s32.totalorder %s145_s7, %s3913_s15  ;;  %p3919_p2 = scmp.lt.s32.totalorder %s3913_s15, %s3913_s15 }
  0x73   :  { %p3920_p3 = por %p3919_p2, %p3918_p1 }
  0x75   :  { %p3921_p4 = pnand %p3920_p3, %p3914_p0 }
  0x77   :  { %3924 = shalt.err (!%p3921_p4)
}
  0x78   :  { %147 = dma.hbm_to_vmem [thread:$0]  %s4920_s9, 128, %s145_s7, [#allocation6]  }
  0x79   :  { %s3933_s16 = scalar_lea.vmem %s165_s11, 128  ;;  %p3938_p6 = scmp.lt.s32.totalorder %s165_s11, %s165_s11 }
  0x7a   :  { %p3934_p5 = scmp.ne.s32.totalorder %s165_s11, %s3933_s16  ;;  %p3939_p7 = scmp.lt.s32.totalorder %s3933_s16, %s3933_s16 }
  0x7c   :  { %p3940_p8 = por %p3939_p7, %p3938_p6 }
  0x7e   :  { %p3941_p9 = pnand %p3940_p8, %p3934_p5 }
  0x80   :  { %3944 = shalt.err (!%p3941_p9)
}
  0x81   :  { %167 = dma.hbm_to_vmem [thread:$0]  %s4930_s17, 128, %s165_s11, [#allocation9]  }
  0x82   :  { %s4862_s18 = smov [#allocation11]   ;;  %s4863_s23 = smov [#allocation14]  }
  0x83   :  { %s186_s22 = sshll.u32 %s4862_s18, 4  ;;  %s208_s26 = sshll.u32 %s4863_s23, 4  ;;  %s187_s22 = int_to_ptr.vmem [resolvable:$true] %s186_s22  ;;  %s209_s26 = int_to_ptr.vmem [resolvable:$true] %s208_s26 }
  0x84   :  { %s3953_s28 = scalar_lea.vmem %s187_s22, 128  ;;  %p3958_p11 = scmp.lt.s32.totalorder %s187_s22, %s187_s22 }
  0x85   :  { %p3954_p10 = scmp.ne.s32.totalorder %s187_s22, %s3953_s28  ;;  %p3959_p12 = scmp.lt.s32.totalorder %s3953_s28, %s3953_s28 }
  0x87   :  { %p3960_p13 = por %p3959_p12, %p3958_p11 }
  0x89   :  { %p3961_p0 = pnand %p3960_p13, %p3954_p10 }
  0x8b   :  { %3964 = shalt.err (!%p3961_p0)
}
  0x8c   :  { %189 = dma.hbm_to_vmem [thread:$0]  %s4945_s29, 128, %s187_s22, [#allocation12]  }
  0x8d   :  { %s3973_s9 = scalar_lea.vmem %s209_s26, 32  ;;  %p3978_p2 = scmp.lt.s32.totalorder %s209_s26, %s209_s26 }
  0x8e   :  { %p3974_p1 = scmp.ne.s32.totalorder %s209_s26, %s3973_s9  ;;  %p3979_p3 = scmp.lt.s32.totalorder %s3973_s9, %s3973_s9 }
  0x90   :  { %p3980_p4 = por %p3979_p3, %p3978_p2 }
  0x92   :  { %p3981_p5 = pnand %p3980_p4, %p3974_p1 }
  0x94   :  { %3984 = shalt.err (!%p3981_p5)
}
  0x95   :  { %211 = dma.hbm_to_vmem [thread:$0]  %s4960_s14, 32, %s209_s26, [#allocation15]  }
  0x96   :  { %s4864_s17 = smov [#allocation17]  }
  0x97   :  { %s230_s1 = sshll.u32 %s4864_s17, 4  ;;  %s231_s1 = int_to_ptr.vmem [resolvable:$true] %s230_s1 }
  0x98   :  { %s3993_s2 = scalar_lea.vmem %s231_s1, 16  ;;  %s3997_s0 = scalar_lea.vmem %s231_s1, 32 }
  0x99   :  { %p3994_p6 = scmp.ne.s32.totalorder %s231_s1, %s3993_s2  ;;  %p3998_p7 = scmp.lt.s32.totalorder %s231_s1, %s231_s1 }
  0x9a   :  { %p3999_p8 = scmp.lt.s32.totalorder %s3997_s0, %s3993_s2 }
  0x9c   :  { %p4000_p9 = por %p3999_p8, %p3998_p7 }
  0x9e   :  { %p4001_p10 = pnand %p4000_p9, %p3994_p6 }
  0xa0   :  { %4004 = shalt.err (!%p4001_p10)
}
  0xa1   :  { %233 = dma.hbm_to_vmem [thread:$0]  %s4970_s24, 16, %s231_s1, [#allocation18]  }
  0xa2   :  { %s4865_s29 = smov [#allocation20]   ;;  %s4866_s10 = smov [#allocation23]  }
  0xa3   :  { %s251_s7 = sshll.u32 %s4865_s29, 4  ;;  %s273_s11 = sshll.u32 %s4866_s10, 4  ;;  %s252_s7 = int_to_ptr.vmem [resolvable:$true] %s251_s7  ;;  %s274_s11 = int_to_ptr.vmem [resolvable:$true] %s273_s11 }
  0xa4   :  { %s4013_s15 = scalar_lea.vmem %s252_s7, 256  ;;  %p4018_p12 = scmp.lt.s32.totalorder %s252_s7, %s252_s7 }
  0xa5   :  { %p4014_p11 = scmp.ne.s32.totalorder %s252_s7, %s4013_s15  ;;  %p4019_p13 = scmp.lt.s32.totalorder %s4013_s15, %s4013_s15 }
  0xa7   :  { %p4020_p0 = por %p4019_p13, %p4018_p12 }
  0xa9   :  { %p4021_p1 = pnand %p4020_p0, %p4014_p11 }
  0xab   :  { %4024 = shalt.err (!%p4021_p1)
}
  0xac   :  { %s4867_s14 = smov 128   ;;  %s4868_s16 = smov 8  }
  0xad   :  { %257 = dma.hbm_to_vmem [thread:$0]  %s4985_s12, 256, %s252_s7, [#allocation21], %s4867_s14, %s4867_s14, %s4868_s16  }
  0xae   :  { %s4033_s24 = scalar_lea.vmem %s274_s11, 512  ;;  %p4038_p3 = scmp.lt.s32.totalorder %s274_s11, %s274_s11 }
  0xaf   :  { %p4034_p2 = scmp.ne.s32.totalorder %s274_s11, %s4033_s24  ;;  %p4039_p4 = scmp.lt.s32.totalorder %s4033_s24, %s4033_s24 }
  0xb1   :  { %p4040_p5 = por %p4039_p4, %p4038_p3 }
  0xb3   :  { %p4041_p6 = pnand %p4040_p5, %p4034_p2 }
  0xb5   :  { %4044 = shalt.err (!%p4041_p6)
}
  0xb6   :  { %279 = dma.hbm_to_vmem [thread:$0]  %s4995_s27, 512, %s274_s11, [#allocation24], %s4867_s14, %s4867_s14, %s4868_s16  }
  0xb7   :  { %s4869_s18 = smov [#allocation26]   ;;  %s4870_s23 = smov [#allocation29]  }
  0xb8   :  { %s296_s22 = sshll.u32 %s4869_s18, 4  ;;  %s315_s26 = sshll.u32 %s4870_s23, 4  ;;  %s297_s22 = int_to_ptr.vmem [resolvable:$true] %s296_s22  ;;  %s316_s26 = int_to_ptr.vmem [resolvable:$true] %s315_s26 }
  0xb9   :  { %s4053_s28 = scalar_lea.vmem %s297_s22, 128  ;;  %p4058_p8 = scmp.lt.s32.totalorder %s297_s22, %s297_s22 }
  0xba   :  { %p4054_p7 = scmp.ne.s32.totalorder %s297_s22, %s4053_s28  ;;  %p4059_p9 = scmp.lt.s32.totalorder %s4053_s28, %s4053_s28 }
  0xbc   :  { %p4060_p10 = por %p4059_p9, %p4058_p8 }
  0xbe   :  { %p4061_p11 = pnand %p4060_p10, %p4054_p7 }
  0xc0   :  { %4064 = shalt.err (!%p4061_p11)
}
  0xc1   :  { %299 = dma.hbm_to_vmem [thread:$0]  %s5005_s3, 128, %s297_s22, [#allocation27]  }
  0xc2   :  { %s4073_s12 = scalar_lea.vmem %s316_s26, 512  ;;  %p4078_p13 = scmp.lt.s32.totalorder %s316_s26, %s316_s26 }
  0xc3   :  { %p4074_p12 = scmp.ne.s32.totalorder %s316_s26, %s4073_s12  ;;  %p4079_p0 = scmp.lt.s32.totalorder %s4073_s12, %s4073_s12 }
  0xc5   :  { %p4080_p1 = por %p4079_p0, %p4078_p13 }
  0xc7   :  { %p4081_p2 = pnand %p4080_p1, %p4074_p12 }
  0xc9   :  { %4084 = shalt.err (!%p4081_p2)
}
  0xca   :  { %321 = dma.hbm_to_vmem [thread:$0]  %s5015_s30, 512, %s316_s26, [#allocation30], %s4867_s14, %s4867_s14, %s4868_s16  }
  0xcb   :  { %s4871_s27 = smov [#allocation32]   ;;  %s4872_s17 = smov [#allocation35]  }
  0xcc   :  { %s337_s9 = sshll.u32 %s4871_s27, 4  ;;  %s361_s1 = sshll.u32 %s4872_s17, 4  ;;  %s338_s9 = int_to_ptr.vmem [resolvable:$true] %s337_s9  ;;  %s362_s1 = int_to_ptr.vmem [resolvable:$true] %s361_s1 }
  0xcd   :  { %s4093_s2 = scalar_lea.vmem %s338_s9, 512  ;;  %p4098_p4 = scmp.lt.s32.totalorder %s338_s9, %s338_s9 }
  0xce   :  { %p4094_p3 = scmp.ne.s32.totalorder %s338_s9, %s4093_s2  ;;  %p4099_p5 = scmp.lt.s32.totalorder %s4093_s2, %s4093_s2 }
  0xd0   :  { %p4100_p6 = por %p4099_p5, %p4098_p4 }
  0xd2   :  { %p4101_p7 = pnand %p4100_p6, %p4094_p3 }
  0xd4   :  { %4104 = shalt.err (!%p4101_p7)
}
  0xd5   :  { %343 = dma.hbm_to_vmem [thread:$0]  %s5025_s20, 512, %s338_s9, [#allocation33], %s4867_s14, %s4867_s14, %s4868_s16  }
  0xd6   :  { %s4113_s3 = scalar_lea.vmem %s362_s1, 512  ;;  %p4118_p9 = scmp.lt.s32.totalorder %s362_s1, %s362_s1 }
  0xd7   :  { %p4114_p8 = scmp.ne.s32.totalorder %s362_s1, %s4113_s3  ;;  %p4119_p10 = scmp.lt.s32.totalorder %s4113_s3, %s4113_s3 }
  0xd9   :  { %p4120_p11 = por %p4119_p10, %p4118_p9 }
  0xdb   :  { %p4121_p12 = pnand %p4120_p11, %p4114_p8 }
  0xdd   :  { %4124 = shalt.err (!%p4121_p12)
}
  0xde   :  { %367 = dma.hbm_to_vmem [thread:$0]  %s5035_s6, 512, %s362_s1, [#allocation36], %s4867_s14, %s4867_s14, %s4868_s16  }
  0xdf   :  { %s4873_s30 = smov [#allocation38]   ;;  %s4874_s29 = smov [#allocation41]  }
  0xe0   :  { %s386_s0 = sshll.u32 %s4873_s30, 4  ;;  %s408_s7 = sshll.u32 %s4874_s29, 4  ;;  %s387_s0 = int_to_ptr.vmem [resolvable:$true] %s386_s0  ;;  %s409_s7 = int_to_ptr.vmem [resolvable:$true] %s408_s7 }
  0xe1   :  { %s4133_s10 = scalar_lea.vmem %s387_s0, 16  ;;  %s4137_s20 = scalar_lea.vmem %s387_s0, 32 }
  0xe2   :  { %p4134_p13 = scmp.ne.s32.totalorder %s387_s0, %s4133_s10  ;;  %p4138_p0 = scmp.lt.s32.totalorder %s387_s0, %s387_s0 }
  0xe3   :  { %p4139_p1 = scmp.lt.s32.totalorder %s4137_s20, %s4133_s10 }
  0xe5   :  { %p4140_p2 = por %p4139_p1, %p4138_p0 }
  0xe7   :  { %p4141_p3 = pnand %p4140_p2, %p4134_p13 }
  0xe9   :  { %4144 = shalt.err (!%p4141_p3)
}
  0xea   :  { %389 = dma.hbm_to_vmem [thread:$0]  %s5050_s21, 16, %s387_s0, [#allocation39]  }
  0xeb   :  { %s4153_s11 = scalar_lea.vmem %s409_s7, 16  ;;  %s4157_s15 = scalar_lea.vmem %s409_s7, 32 }
  0xec   :  { %p4154_p4 = scmp.ne.s32.totalorder %s409_s7, %s4153_s11  ;;  %p4158_p5 = scmp.lt.s32.totalorder %s409_s7, %s409_s7 }
  0xed   :  { %p4159_p6 = scmp.lt.s32.totalorder %s4157_s15, %s4153_s11 }
  0xef   :  { %p4160_p7 = por %p4159_p6, %p4158_p5 }
  0xf1   :  { %p4161_p8 = pnand %p4160_p7, %p4154_p4 }
  0xf3   :  { %4164 = shalt.err (!%p4161_p8)
}
  0xf4   :  { %411 = dma.hbm_to_vmem [thread:$0]  %s5060_s4, 16, %s409_s7, [#allocation42]  }
  0xf5   :  { %s4875_s6 = smov [#allocation44]   ;;  %s4876_s18 = smov [#allocation47]  }
  0xf6   :  { %s429_s24 = sshll.u32 %s4875_s6, 4  ;;  %s453_s22 = sshll.u32 %s4876_s18, 4  ;;  %s430_s24 = int_to_ptr.vmem [resolvable:$true] %s429_s24  ;;  %s454_s22 = int_to_ptr.vmem [resolvable:$true] %s453_s22 }
  0xf7   :  { %s4173_s23 = scalar_lea.vmem %s430_s24, 512  ;;  %p4178_p10 = scmp.lt.s32.totalorder %s430_s24, %s430_s24 }
  0xf8   :  { %p4174_p9 = scmp.ne.s32.totalorder %s430_s24, %s4173_s23  ;;  %p4179_p11 = scmp.lt.s32.totalorder %s4173_s23, %s4173_s23 }
  0xfa   :  { %p4180_p12 = por %p4179_p11, %p4178_p10 }
  0xfc   :  { %p4181_p13 = pnand %p4180_p12, %p4174_p9 }
  0xfe   :  { %4184 = shalt.err (!%p4181_p13)
}
  0xff   :  { %435 = dma.hbm_to_vmem [thread:$0]  %s5070_s25, 512, %s430_s24, [#allocation45], %s4867_s14, %s4867_s14, %s4868_s16  }
 0x100   :  { %s4193_s21 = scalar_lea.vmem %s454_s22, 512  ;;  %p4198_p1 = scmp.lt.s32.totalorder %s454_s22, %s454_s22 }
 0x101   :  { %p4194_p0 = scmp.ne.s32.totalorder %s454_s22, %s4193_s21  ;;  %p4199_p2 = scmp.lt.s32.totalorder %s4193_s21, %s4193_s21 }
 0x103   :  { %p4200_p3 = por %p4199_p2, %p4198_p1 }
 0x105   :  { %p4201_p4 = pnand %p4200_p3, %p4194_p0 }
 0x107   :  { %4204 = shalt.err (!%p4201_p4)
}
 0x108   :  { %s5512_s4 = sld [smem:[#allocation110_spill]]  ;;  %s4877_s26 = smov [#allocation50]  }
 0x109   :  { %s475_s28 = sshll.u32 %s4877_s26, 4  ;;  %s4878_s12 = smov [#allocation53]   ;;  %s476_s28 = int_to_ptr.vmem [resolvable:$true] %s475_s28 }
 0x10a   :  { %s497_s27 = sshll.u32 %s4878_s12, 4  ;;  %s4213_s9 = scalar_lea.vmem %s476_s28, 512  ;;  %s498_s27 = int_to_ptr.vmem [resolvable:$true] %s497_s27 }
 0x10b   :  { %p4214_p5 = scmp.ne.s32.totalorder %s476_s28, %s4213_s9  ;;  %p4218_p6 = scmp.lt.s32.totalorder %s476_s28, %s476_s28 }
 0x10c   :  { %p4219_p7 = scmp.lt.s32.totalorder %s4213_s9, %s4213_s9 }
 0x10e   :  { %459 = dma.hbm_to_vmem [thread:$0]  %s5512_s4, 512, %s454_s22, [#allocation48], %s4867_s14, %s4867_s14, %s4868_s16  }
 0x10f   :  { %p4220_p8 = por %p4219_p7, %p4218_p6 }
 0x111   :  { %p4221_p9 = pnand %p4220_p8, %p4214_p5 }
 0x113   :  { %4224 = shalt.err (!%p4221_p9)
}
 0x114   :  { %s5513_s25 = sld [smem:[#allocation112_spill]]  ;;  %s4233_s17 = scalar_lea.vmem %s498_s27, 512 }
 0x115   :  { %p4234_p10 = scmp.ne.s32.totalorder %s498_s27, %s4233_s17  ;;  %p4238_p11 = scmp.lt.s32.totalorder %s498_s27, %s498_s27 }
 0x116   :  { %p4239_p12 = scmp.lt.s32.totalorder %s4233_s17, %s4233_s17 }
 0x118   :  { %p4240_p13 = por %p4239_p12, %p4238_p11 }
 0x11a   :  { %481 = dma.hbm_to_vmem [thread:$0]  %s5513_s25, 512, %s476_s28, [#allocation51], %s4867_s14, %s4867_s14, %s4868_s16  }
 0x11b   :  { %p4241_p0 = pnand %p4240_p13, %p4234_p10 }
 0x11d   :  { %4244 = shalt.err (!%p4241_p0)
}
 0x11e   :  { %s5514_s1 = sld [smem:[#allocation114_spill]]  ;;  %s4879_s2 = smov [#allocation56]  }
 0x11f   :  { %s519_s3 = sshll.u32 %s4879_s2, 4  ;;  %s4880_s30 = smov [#allocation59]   ;;  %s520_s3 = int_to_ptr.vmem [resolvable:$true] %s519_s3 }
 0x120   :  { %s543_s0 = sshll.u32 %s4880_s30, 4  ;;  %s4253_s29 = scalar_lea.vmem %s520_s3, 512  ;;  %s544_s0 = int_to_ptr.vmem [resolvable:$true] %s543_s0 }
 0x121   :  { %p4254_p1 = scmp.ne.s32.totalorder %s520_s3, %s4253_s29  ;;  %p4258_p2 = scmp.lt.s32.totalorder %s520_s3, %s520_s3 }
 0x122   :  { %p4259_p3 = scmp.lt.s32.totalorder %s4253_s29, %s4253_s29 }
 0x124   :  { %503 = dma.hbm_to_vmem [thread:$0]  %s5514_s1, 512, %s498_s27, [#allocation54], %s4867_s14, %s4867_s14, %s4868_s16  }
 0x125   :  { %p4260_p4 = por %p4259_p3, %p4258_p2 }
 0x127   :  { %p4261_p5 = pnand %p4260_p4, %p4254_p1 }
 0x129   :  { %4264 = shalt.err (!%p4261_p5)
}
 0x12a   :  { %s5515_s7 = sld [smem:[#allocation116_spill]]  ;;  %s4273_s10 = scalar_lea.vmem %s544_s0, 512 }
 0x12b   :  { %p4274_p6 = scmp.ne.s32.totalorder %s544_s0, %s4273_s10  ;;  %p4278_p7 = scmp.lt.s32.totalorder %s544_s0, %s544_s0 }
 0x12c   :  { %p4279_p8 = scmp.lt.s32.totalorder %s4273_s10, %s4273_s10 }
 0x12e   :  { %p4280_p9 = por %p4279_p8, %p4278_p7 }
 0x130   :  { %525 = dma.hbm_to_vmem [thread:$0]  %s5515_s7, 512, %s520_s3, [#allocation57], %s4867_s14, %s4867_s14, %s4868_s16  }
 0x131   :  { %p4281_p10 = pnand %p4280_p9, %p4274_p6 }
 0x133   :  { %4284 = shalt.err (!%p4281_p10)
}
 0x134   :  { %s5516_s20 = sld [smem:[#allocation118_spill]]  ;;  %s4881_s11 = smov [#allocation2]  }
 0x135   :  { %s134_s15 = sshll.u32 %s4881_s11, 4  ;;  %s4882_s6 = smov [#allocation7]   ;;  %s135_s15 = int_to_ptr.vmem [resolvable:$true] %s134_s15 }
 0x136   :  { %s154_s24 = sshll.u32 %s4882_s6, 4  ;;  %s4293_s18 = scalar_lea.vmem %s135_s15, 128  ;;  %s155_s24 = int_to_ptr.vmem [resolvable:$true] %s154_s24 }
 0x137   :  { %p4294_p11 = scmp.ne.s32.totalorder %s135_s15, %s4293_s18  ;;  %p4298_p12 = scmp.lt.s32.totalorder %s135_s15, %s135_s15 }
 0x138   :  { %p4299_p13 = scmp.lt.s32.totalorder %s4293_s18, %s4293_s18 }
 0x13a   :  { %549 = dma.hbm_to_vmem [thread:$0]  %s5516_s20, 512, %s544_s0, [#allocation60], %s4867_s14, %s4867_s14, %s4868_s16  }
 0x13b   :  { %p4300_p0 = por %p4299_p13, %p4298_p12 }
 0x13d   :  { %p4301_p1 = pnand %p4300_p0, %p4294_p11 }
 0x13f   :  { %4304 = shalt.err (!%p4301_p1)
}
 0x140   :  { %s5517_s22 = sld [smem:[#allocation91_spill]]  ;;  %s4313_s23 = scalar_lea.vmem %s155_s24, 32 }
 0x141   :  { %p4314_p2 = scmp.ne.s32.totalorder %s155_s24, %s4313_s23  ;;  %p4318_p3 = scmp.lt.s32.totalorder %s155_s24, %s155_s24 }
 0x142   :  { %p4319_p4 = scmp.lt.s32.totalorder %s4313_s23, %s4313_s23 }
 0x144   :  { %p4320_p5 = por %p4319_p4, %p4318_p3 }
 0x146   :  { %137 = dma.hbm_to_vmem [thread:$0]  %s5517_s22, 128, %s135_s15, [#allocation3]  }
 0x147   :  { %p4321_p6 = pnand %p4320_p5, %p4314_p2 }
 0x149   :  { %4324 = shalt.err (!%p4321_p6)
}
 0x14a   :  { %s5518_s21 = sld [smem:[#allocation92_spill]]  ;;  %s4883_s4 = smov [#allocation10]  }
 0x14b   :  { %s176_s26 = sshll.u32 %s4883_s4, 4  ;;  %s4884_s28 = smov [#allocation13]   ;;  %s177_s26 = int_to_ptr.vmem [resolvable:$true] %s176_s26 }
 0x14c   :  { %s198_s12 = sshll.u32 %s4884_s28, 4  ;;  %s4333_s27 = scalar_lea.vmem %s177_s26, 128  ;;  %s199_s12 = int_to_ptr.vmem [resolvable:$true] %s198_s12 }
 0x14d   :  { %p4334_p7 = scmp.ne.s32.totalorder %s177_s26, %s4333_s27  ;;  %p4338_p8 = scmp.lt.s32.totalorder %s177_s26, %s177_s26 }
 0x14e   :  { %p4339_p9 = scmp.lt.s32.totalorder %s4333_s27, %s4333_s27 }
 0x150   :  { %157 = dma.hbm_to_vmem [thread:$0]  %s5518_s21, 32, %s155_s24, [#allocation6]  }
 0x151   :  { %p4340_p10 = por %p4339_p9, %p4338_p8 }
 0x153   :  { %p4341_p11 = pnand %p4340_p10, %p4334_p7 }
 0x155   :  { %4344 = shalt.err (!%p4341_p11)
}
 0x156   :  { %s5519_s9 = sld [smem:[#allocation94_spill]]  ;;  %s4353_s25 = scalar_lea.vmem %s199_s12, 32 }
 0x157   :  { %p4354_p12 = scmp.ne.s32.totalorder %s199_s12, %s4353_s25  ;;  %p4358_p13 = scmp.lt.s32.totalorder %s199_s12, %s199_s12 }
 0x158   :  { %p4359_p0 = scmp.lt.s32.totalorder %s4353_s25, %s4353_s25 }
 0x15a   :  { %p4360_p1 = por %p4359_p0, %p4358_p13 }
 0x15c   :  { %179 = dma.hbm_to_vmem [thread:$0]  %s5519_s9, 128, %s177_s26, [#allocation9]  }
 0x15d   :  { %p4361_p2 = pnand %p4360_p1, %p4354_p12 }
 0x15f   :  { %4364 = shalt.err (!%p4361_p2)
}
 0x160   :  { %s5520_s17 = sld [smem:[#allocation96_spill]]  ;;  %s4885_s1 = smov [#allocation16]  }
 0x161   :  { %s217_s2 = sshll.u32 %s4885_s1, 4  ;;  %s4886_s3 = smov [#allocation19]   ;;  %s218_s2 = int_to_ptr.vmem [resolvable:$true] %s217_s2 }
 0x162   :  { %s242_s30 = sshll.u32 %s4886_s3, 4  ;;  %s4373_s0 = scalar_lea.vmem %s218_s2, 256  ;;  %s243_s30 = int_to_ptr.vmem [resolvable:$true] %s242_s30 }
 0x163   :  { %p4374_p3 = scmp.ne.s32.totalorder %s218_s2, %s4373_s0  ;;  %p4378_p4 = scmp.lt.s32.totalorder %s218_s2, %s218_s2 }
 0x164   :  { %p4379_p5 = scmp.lt.s32.totalorder %s4373_s0, %s4373_s0 }
 0x166   :  { %201 = dma.hbm_to_vmem [thread:$0]  %s5520_s17, 32, %s199_s12, [#allocation12]  }
 0x167   :  { %p4380_p6 = por %p4379_p5, %p4378_p4 }
 0x169   :  { %p4381_p7 = pnand %p4380_p6, %p4374_p3 }
 0x16b   :  { %4384 = shalt.err (!%p4381_p7)
}
 0x16c   :  { %s5521_s29 = sld [smem:[#allocation97_spill]]  ;;  %s4393_s7 = scalar_lea.vmem %s243_s30, 16 }
 0x16d   :  { %p4394_p8 = scmp.ne.s32.totalorder %s243_s30, %s4393_s7  ;;  %s4397_s10 = scalar_lea.vmem %s243_s30, 32 }
 0x16e   :  { %p4398_p9 = scmp.lt.s32.totalorder %s243_s30, %s243_s30  ;;  %p4399_p10 = scmp.lt.s32.totalorder %s4397_s10, %s4393_s7 }
 0x170   :  { %p4400_p11 = por %p4399_p10, %p4398_p9 }
 0x172   :  { %223 = dma.hbm_to_vmem [thread:$0]  %s5521_s29, 256, %s218_s2, [#allocation15], %s4867_s14, %s4867_s14, %s4868_s16  }
 0x173   :  { %p4401_p12 = pnand %p4400_p11, %p4394_p8 }
 0x175   :  { %4404 = shalt.err (!%p4401_p12)
}
 0x176   :  { %s5522_s20 = sld [smem:[#allocation99_spill]]  ;;  %s4887_s11 = smov [#allocation22]  }
 0x177   :  { %s264_s15 = sshll.u32 %s4887_s11, 4  ;;  %s4888_s6 = smov [#allocation25]   ;;  %s265_s15 = int_to_ptr.vmem [resolvable:$true] %s264_s15 }
 0x178   :  { %s286_s24 = sshll.u32 %s4888_s6, 4  ;;  %s4413_s18 = scalar_lea.vmem %s265_s15, 16  ;;  %s287_s24 = int_to_ptr.vmem [resolvable:$true] %s286_s24 }
 0x179   :  { %p4414_p13 = scmp.ne.s32.totalorder %s265_s15, %s4413_s18  ;;  %s4417_s22 = scalar_lea.vmem %s265_s15, 32 }
 0x17a   :  { %p4418_p0 = scmp.lt.s32.totalorder %s265_s15, %s265_s15  ;;  %p4419_p1 = scmp.lt.s32.totalorder %s4417_s22, %s4413_s18 }
 0x17c   :  { %245 = dma.hbm_to_vmem [thread:$0]  %s5522_s20, 16, %s243_s30, [#allocation18]  }
 0x17d   :  { %p4420_p2 = por %p4419_p1, %p4418_p0 }
 0x17f   :  { %p4421_p3 = pnand %p4420_p2, %p4414_p13 }
 0x181   :  { %4424 = shalt.err (!%p4421_p3)
}
 0x182   :  { %s5523_s23 = sld [smem:[#allocation100_spill]]  ;;  %s4433_s21 = scalar_lea.vmem %s287_s24, 16 }
 0x183   :  { %p4434_p4 = scmp.ne.s32.totalorder %s287_s24, %s4433_s21  ;;  %s4437_s4 = scalar_lea.vmem %s287_s24, 32 }
 0x184   :  { %p4438_p5 = scmp.lt.s32.totalorder %s287_s24, %s287_s24  ;;  %p4439_p6 = scmp.lt.s32.totalorder %s4437_s4, %s4433_s21 }
 0x186   :  { %p4440_p7 = por %p4439_p6, %p4438_p5 }
 0x188   :  { %267 = dma.hbm_to_vmem [thread:$0]  %s5523_s23, 16, %s265_s15, [#allocation21]  }
 0x189   :  { %p4441_p8 = pnand %p4440_p7, %p4434_p4 }
 0x18b   :  { %4444 = shalt.err (!%p4441_p8)
}
 0x18c   :  { %s5524_s26 = sld [smem:[#allocation101_spill]]  ;;  %s4889_s28 = smov [#allocation28]  }
 0x18d   :  { %s306_s12 = sshll.u32 %s4889_s28, 4  ;;  %s4890_s27 = smov [#allocation31]   ;;  %s307_s12 = int_to_ptr.vmem [resolvable:$true] %s306_s12 }
 0x18e   :  { %s328_s9 = sshll.u32 %s4890_s27, 4  ;;  %s4453_s25 = scalar_lea.vmem %s307_s12, 16  ;;  %s329_s9 = int_to_ptr.vmem [resolvable:$true] %s328_s9 }
 0x18f   :  { %p4454_p9 = scmp.ne.s32.totalorder %s307_s12, %s4453_s25  ;;  %s4457_s17 = scalar_lea.vmem %s307_s12, 32 }
 0x190   :  { %p4458_p10 = scmp.lt.s32.totalorder %s307_s12, %s307_s12  ;;  %p4459_p11 = scmp.lt.s32.totalorder %s4457_s17, %s4453_s25 }
 0x192   :  { %289 = dma.hbm_to_vmem [thread:$0]  %s5524_s26, 16, %s287_s24, [#allocation24]  }
 0x193   :  { %p4460_p12 = por %p4459_p11, %p4458_p10 }
 0x195   :  { %p4461_p13 = pnand %p4460_p12, %p4454_p9 }
 0x197   :  { %4464 = shalt.err (!%p4461_p13)
}
 0x198   :  { %s5525_s1 = sld [smem:[#allocation102_spill]]  ;;  %s4473_s2 = scalar_lea.vmem %s329_s9, 16 }
 0x199   :  { %p4474_p0 = scmp.ne.s32.totalorder %s329_s9, %s4473_s2  ;;  %s4477_s3 = scalar_lea.vmem %s329_s9, 32 }
 0x19a   :  { %p4478_p1 = scmp.lt.s32.totalorder %s329_s9, %s329_s9  ;;  %p4479_p2 = scmp.lt.s32.totalorder %s4477_s3, %s4473_s2 }
 0x19c   :  { %p4480_p3 = por %p4479_p2, %p4478_p1 }
 0x19e   :  { %309 = dma.hbm_to_vmem [thread:$0]  %s5525_s1, 16, %s307_s12, [#allocation27]  }
 0x19f   :  { %p4481_p4 = pnand %p4480_p3, %p4474_p0 }
 0x1a1   :  { %4484 = shalt.err (!%p4481_p4)
}
 0x1a2   :  { %s5526_s30 = sld [smem:[#allocation103_spill]]  ;;  %s4891_s0 = smov [#allocation34]  }
 0x1a3   :  { %s349_s29 = sshll.u32 %s4891_s0, 4  ;;  %s4892_s7 = smov [#allocation37]   ;;  %s350_s29 = int_to_ptr.vmem [resolvable:$true] %s349_s29 }
 0x1a4   :  { %s374_s10 = sshll.u32 %s4892_s7, 4  ;;  %s4493_s20 = scalar_lea.vmem %s350_s29, 512  ;;  %s375_s10 = int_to_ptr.vmem [resolvable:$true] %s374_s10 }
 0x1a5   :  { %p4494_p5 = scmp.ne.s32.totalorder %s350_s29, %s4493_s20  ;;  %p4498_p6 = scmp.lt.s32.totalorder %s350_s29, %s350_s29 }
 0x1a6   :  { %p4499_p7 = scmp.lt.s32.totalorder %s4493_s20, %s4493_s20 }
 0x1a8   :  { %331 = dma.hbm_to_vmem [thread:$0]  %s5526_s30, 16, %s329_s9, [#allocation30]  }
 0x1a9   :  { %p4500_p8 = por %p4499_p7, %p4498_p6 }
 0x1ab   :  { %p4501_p9 = pnand %p4500_p8, %p4494_p5 }
 0x1ad   :  { %4504 = shalt.err (!%p4501_p9)
}
 0x1ae   :  { %s5527_s11 = sld [smem:[#allocation104_spill]]  ;;  %s4513_s15 = scalar_lea.vmem %s375_s10, 16 }
 0x1af   :  { %p4514_p10 = scmp.ne.s32.totalorder %s375_s10, %s4513_s15  ;;  %s4517_s6 = scalar_lea.vmem %s375_s10, 32 }
 0x1b0   :  { %p4518_p11 = scmp.lt.s32.totalorder %s375_s10, %s375_s10  ;;  %p4519_p12 = scmp.lt.s32.totalorder %s4517_s6, %s4513_s15 }
 0x1b2   :  { %p4520_p13 = por %p4519_p12, %p4518_p11 }
 0x1b4   :  { %355 = dma.hbm_to_vmem [thread:$0]  %s5527_s11, 512, %s350_s29, [#allocation33], %s4867_s14, %s4867_s14, %s4868_s16  }
 0x1b5   :  { %p4521_p0 = pnand %p4520_p13, %p4514_p10 }
 0x1b7   :  { %4524 = shalt.err (!%p4521_p0)
}
 0x1b8   :  { %s5528_s24 = sld [smem:[#allocation105_spill]]  ;;  %s4893_s18 = smov [#allocation40]  }
 0x1b9   :  { %s395_s22 = sshll.u32 %s4893_s18, 4  ;;  %s4894_s23 = smov [#allocation43]   ;;  %s396_s22 = int_to_ptr.vmem [resolvable:$true] %s395_s22 }
 0x1ba   :  { %s417_s21 = sshll.u32 %s4894_s23, 4  ;;  %s4533_s4 = scalar_lea.vmem %s396_s22, 512  ;;  %s418_s21 = int_to_ptr.vmem [resolvable:$true] %s417_s21 }
 0x1bb   :  { %p4534_p1 = scmp.ne.s32.totalorder %s396_s22, %s4533_s4  ;;  %p4538_p2 = scmp.lt.s32.totalorder %s396_s22, %s396_s22 }
 0x1bc   :  { %p4539_p3 = scmp.lt.s32.totalorder %s4533_s4, %s4533_s4 }
 0x1be   :  { %377 = dma.hbm_to_vmem [thread:$0]  %s5528_s24, 16, %s375_s10, [#allocation36]  }
 0x1bf   :  { %p4540_p4 = por %p4539_p3, %p4538_p2 }
 0x1c1   :  { %p4541_p5 = pnand %p4540_p4, %p4534_p1 }
 0x1c3   :  { %4544 = shalt.err (!%p4541_p5)
}
 0x1c4   :  { %s5529_s26 = sld [smem:[#allocation107_spill]]  ;;  %s4553_s28 = scalar_lea.vmem %s418_s21, 512 }
 0x1c5   :  { %p4554_p6 = scmp.ne.s32.totalorder %s418_s21, %s4553_s28  ;;  %p4558_p7 = scmp.lt.s32.totalorder %s418_s21, %s418_s21 }
 0x1c6   :  { %p4559_p8 = scmp.lt.s32.totalorder %s4553_s28, %s4553_s28 }
 0x1c8   :  { %p4560_p9 = por %p4559_p8, %p4558_p7 }
 0x1ca   :  { %401 = dma.hbm_to_vmem [thread:$0]  %s5529_s26, 512, %s396_s22, [#allocation39], %s4867_s14, %s4867_s14, %s4868_s16  }
 0x1cb   :  { %p4561_p10 = pnand %p4560_p9, %p4554_p6 }
 0x1cd   :  { %4564 = shalt.err (!%p4561_p10)
}
 0x1ce   :  { %s5530_s12 = sld [smem:[#allocation108_spill]]  ;;  %s4895_s27 = smov [#allocation46]  }
 0x1cf   :  { %s441_s9 = sshll.u32 %s4895_s27, 4  ;;  %s4896_s25 = smov [#allocation49]   ;;  %s442_s9 = int_to_ptr.vmem [resolvable:$true] %s441_s9 }
 0x1d0   :  { %s466_s17 = sshll.u32 %s4896_s25, 4  ;;  %s4573_s1 = scalar_lea.vmem %s442_s9, 512  ;;  %s467_s17 = int_to_ptr.vmem [resolvable:$true] %s466_s17 }
 0x1d1   :  { %p4574_p11 = scmp.ne.s32.totalorder %s442_s9, %s4573_s1  ;;  %p4578_p12 = scmp.lt.s32.totalorder %s442_s9, %s442_s9 }
 0x1d2   :  { %p4579_p13 = scmp.lt.s32.totalorder %s4573_s1, %s4573_s1 }
 0x1d4   :  { %423 = dma.hbm_to_vmem [thread:$0]  %s5530_s12, 512, %s418_s21, [#allocation42], %s4867_s14, %s4867_s14, %s4868_s16  }
 0x1d5   :  { %p4580_p0 = por %p4579_p13, %p4578_p12 }
 0x1d7   :  { %p4581_p1 = pnand %p4580_p0, %p4574_p11 }
 0x1d9   :  { %4584 = shalt.err (!%p4581_p1)
}
 0x1da   :  { %s5531_s2 = sld [smem:[#allocation109_spill]]  ;;  %s4593_s3 = scalar_lea.vmem %s467_s17, 16 }
 0x1db   :  { %p4594_p2 = scmp.ne.s32.totalorder %s467_s17, %s4593_s3  ;;  %s4597_s30 = scalar_lea.vmem %s467_s17, 32 }
 0x1dc   :  { %p4598_p3 = scmp.lt.s32.totalorder %s467_s17, %s467_s17  ;;  %p4599_p4 = scmp.lt.s32.totalorder %s4597_s30, %s4593_s3 }
 0x1de   :  { %p4600_p5 = por %p4599_p4, %p4598_p3 }
 0x1e0   :  { %447 = dma.hbm_to_vmem [thread:$0]  %s5531_s2, 512, %s442_s9, [#allocation45], %s4867_s14, %s4867_s14, %s4868_s16  }
 0x1e1   :  { %p4601_p6 = pnand %p4600_p5, %p4594_p2 }
 0x1e3   :  { %4604 = shalt.err (!%p4601_p6)
}
 0x1e4   :  { %s5532_s0 = sld [smem:[#allocation111_spill]]  ;;  %s4897_s29 = smov [#allocation52]  }
 0x1e5   :  { %s488_s7 = sshll.u32 %s4897_s29, 4  ;;  %s4898_s10 = smov [#allocation55]   ;;  %s489_s7 = int_to_ptr.vmem [resolvable:$true] %s488_s7 }
 0x1e6   :  { %s510_s20 = sshll.u32 %s4898_s10, 4  ;;  %s4613_s11 = scalar_lea.vmem %s489_s7, 16  ;;  %s511_s20 = int_to_ptr.vmem [resolvable:$true] %s510_s20 }
 0x1e7   :  { %p4614_p7 = scmp.ne.s32.totalorder %s489_s7, %s4613_s11  ;;  %s4617_s15 = scalar_lea.vmem %s489_s7, 32 }
 0x1e8   :  { %p4618_p8 = scmp.lt.s32.totalorder %s489_s7, %s489_s7  ;;  %p4619_p9 = scmp.lt.s32.totalorder %s4617_s15, %s4613_s11 }
 0x1ea   :  { %469 = dma.hbm_to_vmem [thread:$0]  %s5532_s0, 16, %s467_s17, [#allocation48]  }
 0x1eb   :  { %p4620_p10 = por %p4619_p9, %p4618_p8 }
 0x1ed   :  { %p4621_p11 = pnand %p4620_p10, %p4614_p7 }
 0x1ef   :  { %4624 = shalt.err (!%p4621_p11)
}
 0x1f0   :  { %s5533_s6 = sld [smem:[#allocation113_spill]]  ;;  %s4633_s24 = scalar_lea.vmem %s511_s20, 16 }
 0x1f1   :  { %p4634_p12 = scmp.ne.s32.totalorder %s511_s20, %s4633_s24  ;;  %s4637_s18 = scalar_lea.vmem %s511_s20, 32 }
 0x1f2   :  { %p4638_p13 = scmp.lt.s32.totalorder %s511_s20, %s511_s20  ;;  %p4639_p0 = scmp.lt.s32.totalorder %s4637_s18, %s4633_s24 }
 0x1f4   :  { %p4640_p1 = por %p4639_p0, %p4638_p13 }
 0x1f6   :  { %491 = dma.hbm_to_vmem [thread:$0]  %s5533_s6, 16, %s489_s7, [#allocation51]  }
 0x1f7   :  { %p4641_p2 = pnand %p4640_p1, %p4634_p12 }
 0x1f9   :  { %4644 = shalt.err (!%p4641_p2)
}
 0x1fa   :  { %s5534_s22 = sld [smem:[#allocation115_spill]]  ;;  %s4899_s23 = smov [#allocation58]  }
 0x1fb   :  { %s531_s21 = sshll.u32 %s4899_s23, 4  ;;  %s4900_s4 = smov [#allocation61]   ;;  %s532_s21 = int_to_ptr.vmem [resolvable:$true] %s531_s21 }
 0x1fc   :  { %s556_s26 = sshll.u32 %s4900_s4, 4  ;;  %s4653_s28 = scalar_lea.vmem %s532_s21, 512  ;;  %s557_s26 = int_to_ptr.vmem [resolvable:$true] %s556_s26 }
 0x1fd   :  { %p4654_p3 = scmp.ne.s32.totalorder %s532_s21, %s4653_s28  ;;  %p4658_p4 = scmp.lt.s32.totalorder %s532_s21, %s532_s21 }
 0x1fe   :  { %p4659_p5 = scmp.lt.s32.totalorder %s4653_s28, %s4653_s28 }
 0x200   :  { %513 = dma.hbm_to_vmem [thread:$0]  %s5534_s22, 16, %s511_s20, [#allocation54]  }
 0x201   :  { %p4660_p6 = por %p4659_p5, %p4658_p4 }
 0x203   :  { %p4661_p7 = pnand %p4660_p6, %p4654_p3 }
 0x205   :  { %4664 = shalt.err (!%p4661_p7)
}
 0x206   :  { %s5535_s12 = sld [smem:[#allocation117_spill]]  ;;  %s4673_s27 = scalar_lea.vmem %s557_s26, 16 }
 0x207   :  { %p4674_p8 = scmp.ne.s32.totalorder %s557_s26, %s4673_s27  ;;  %s4677_s9 = scalar_lea.vmem %s557_s26, 32 }
 0x208   :  { %p4678_p9 = scmp.lt.s32.totalorder %s557_s26, %s557_s26  ;;  %p4679_p10 = scmp.lt.s32.totalorder %s4677_s9, %s4673_s27 }
 0x20a   :  { %p4680_p11 = por %p4679_p10, %p4678_p9 }
 0x20c   :  { %537 = dma.hbm_to_vmem [thread:$0]  %s5535_s12, 512, %s532_s21, [#allocation57], %s4867_s14, %s4867_s14, %s4868_s16  }
 0x20d   :  { %p4681_p12 = pnand %p4680_p11, %p4674_p8 }
 0x20f   :  { %4684 = shalt.err (!%p4681_p12)
}
 0x210   :  { %s5536_s25 = sld [smem:[#allocation119_spill]]  ;;  %s4901_s17 = smov [#allocation62]  }
 0x211   :  { %s569_s1 = sshll.u32 %s4901_s17, 4  ;;  %s570_s1 = int_to_ptr.vmem [resolvable:$true] %s569_s1 }
 0x212   :  { %s4693_s2 = scalar_lea.vmem %s570_s1, 512  ;;  %p4698_p0 = scmp.lt.s32.totalorder %s570_s1, %s570_s1 }
 0x213   :  { %p4694_p13 = scmp.ne.s32.totalorder %s570_s1, %s4693_s2  ;;  %p4699_p1 = scmp.lt.s32.totalorder %s4693_s2, %s4693_s2 }
 0x215   :  { %p4700_p2 = por %p4699_p1, %p4698_p0 }
 0x216   :  { %559 = dma.hbm_to_vmem [thread:$0]  %s5536_s25, 16, %s557_s26, [#allocation60]  }
 0x217   :  { %p4701_p3 = pnand %p4700_p2, %p4694_p13 }
 0x219   :  { %4704 = shalt.err (!%p4701_p3)
}
 0x21a   :  { %s5537_s3 = sld [smem:[#allocation122_spill]] }
 0x220   :  { %575 = dma.hbm_to_vmem [thread:$0]  %s5537_s3, 512, %s570_s1, [#allocation63], %s4867_s14, %s4867_s14, %s4868_s16  }
 0x221   :  { %4765 = dma.done.wait [#allocation3], 128  }
 0x222   :  { %4766 = vsyncadd [#allocation3], 4294967168 }
 0x223   :  { %4767 = dma.done.wait [#allocation6], 160  }
 0x224   :  { %4768 = vsyncadd [#allocation6], 4294967136 }
 0x225   :  { %4769 = dma.done.wait [#allocation9], 256  }
 0x226   :  { %4770 = vsyncadd [#allocation9], 4294967040 }
 0x227   :  { %4771 = dma.done.wait [#allocation12], 160  }
 0x228   :  { %4772 = vsyncadd [#allocation12], 4294967136 }
 0x229   :  { %4773 = dma.done.wait [#allocation15], 288  }
 0x22a   :  { %4774 = vsyncadd [#allocation15], 4294967008 }
 0x22b   :  { %4775 = dma.done.wait [#allocation18], 32  }
 0x22c   :  { %4776 = vsyncadd [#allocation18], 4294967264 }
 0x22d   :  { %4777 = dma.done.wait [#allocation21], 272  }
 0x22e   :  { %4778 = vsyncadd [#allocation21], 4294967024 }
 0x22f   :  { %4779 = dma.done.wait [#allocation24], 528  }
 0x230   :  { %4780 = vsyncadd [#allocation24], 4294966768 }
 0x231   :  { %4781 = dma.done.wait [#allocation27], 144  }
 0x232   :  { %4782 = vsyncadd [#allocation27], 4294967152 }
 0x233   :  { %4783 = dma.done.wait [#allocation30], 528  }
 0x234   :  { %4784 = vsyncadd [#allocation30], 4294966768 }
 0x235   :  { %4785 = dma.done.wait [#allocation33], 1024  }
 0x236   :  { %4786 = vsyncadd [#allocation33], 4294966272 }
 0x237   :  { %4787 = dma.done.wait [#allocation36], 528  }
 0x238   :  { %4788 = vsyncadd [#allocation36], 4294966768 }
 0x239   :  { %4789 = dma.done.wait [#allocation39], 528  }
 0x23a   :  { %4790 = vsyncadd [#allocation39], 4294966768 }
 0x23b   :  { %4791 = dma.done.wait [#allocation42], 528  }
 0x23c   :  { %4792 = vsyncadd [#allocation42], 4294966768 }
 0x23d   :  { %4793 = dma.done.wait [#allocation45], 1024  }
 0x23e   :  { %4794 = vsyncadd [#allocation45], 4294966272 }
 0x23f   :  { %4795 = dma.done.wait [#allocation48], 528  }
 0x240   :  { %4796 = vsyncadd [#allocation48], 4294966768 }
 0x241   :  { %4797 = dma.done.wait [#allocation51], 528  }
 0x242   :  { %4798 = vsyncadd [#allocation51], 4294966768 }
 0x243   :  { %4799 = dma.done.wait [#allocation54], 528  }
 0x244   :  { %4800 = vsyncadd [#allocation54], 4294966768 }
 0x245   :  { %4801 = dma.done.wait [#allocation57], 1024  }
 0x246   :  { %4802 = vsyncadd [#allocation57], 4294966272 }
 0x247   :  { %4803 = dma.done.wait [#allocation60], 528  }
 0x248   :  { %4804 = vsyncadd [#allocation60], 4294966768 }
 0x249   :  { %4805 = dma.done.wait [#allocation63], 512  }
 0x24a   :  { %4806 = vsyncadd [#allocation63], 4294966784  ;;  %v4902_v0 = vmov 0.0   ;;  %vm4903_vm0 = vmmov 0   ;;  %vm712_vm1 = vcmask 1045504   ;;  %vm915_vm2 = vcmask 1041408  }
 0x24b   :  { %3498 = vmatprep.subr.mxu1 %v4902_v0  ;;  %3502 = vmatprep.mubr.msk.f32.mxu1 %vm4903_vm0, %v4902_v0  ;;  %v700_v1 = vld [vmem:[#allocation16 + $0x8] sm:$0x3f]  ;;  %v699_v2 = vld [vmem:[#allocation16] sm:$0xff]  ;;  %v698_v3 = vld [vmem:[#allocation2] sm:$0xff]  ;;  %vm708_vm3 = vcmask 113664   ;;  %s5538_s14 = sld [smem:[#allocation98_spill]] }
 0x24c   :  { %3516 = vmatprep.subr.mxu0 %v4902_v0  ;;  %3520 = vmatprep.mubr.msk.f32.mxu0 %vm4903_vm0, %v4902_v0  ;;  %v903_v4 = vld [vmem:[#allocation20 + $0x8] sm:$0x3]  ;;  %v902_v5 = vld [vmem:[#allocation20] sm:$0xff]  ;;  %vm911_vm4 = vcmask 80896   ;;  %v1007_v11 = vld [vmem:[#allocation23 + $0x18] sm:$0xff]  ;;  %vm812_vm7 = vcmask 261120  }
 0x24d   :  { %3499 = vmatpush3.msk.msra.mxu1 %vm712_vm1, %v700_v1  ;;  %3517 = vmatpush3.msk.msra.mxu0 %vm915_vm2, %v903_v4  ;;  %v901_v6 = vld [vmem:[#allocation5] sm:$0xff]  ;;  %v1005_v13 = vld [vmem:[#allocation23 + $0x8] sm:$0xff]  ;;  %v1004_v14 = vld [vmem:[#allocation23] sm:$0xff]  ;;  %vm1112_vm8 = vcmask 48128   ;;  %vm1304_vm11 = vcmask 64512   ;;  %s5539_s16 = sld [smem:[#allocation93_spill]] }
 0x24e   :  { %3500 = vmatprep.subr.mxu1 %v4902_v0  ;;  %3518 = vmatprep.subr.mxu0 %v4902_v0  ;;  %v1006_v12 = vld [vmem:[#allocation23 + $0x10] sm:$0xff]  ;;  %v3332_v15 = vld [vmem:[#allocation17] ss:$0 sm:$0xff]  ;;  %v3337_v16 = vld [vmem:[#allocation22] ss:$0 sm:$0xff]  ;;  %vm1379_vm13 = vcmask 15360  }
 0x24f   :  { %3501 = vmatpush3.msra.mxu1 %v699_v2  ;;  %3519 = vmatpush3.msra.mxu0 %v902_v5  ;;  %v1104_v49 = vld [vmem:[#allocation26] sm:$0x3f]  ;;  %v1103_v52 = vld [vmem:[#allocation7] sm:$0x3]  ;;  %v1205_v55 = vld [vmem:[#allocation29 + $0x8] sm:$0xff]  ;;  %s5540_s30 = sld [smem:[#allocation106_spill]] }
 0x250   :  { %3503 = vmatmul.mubr.msk.f32.vlgmr.msra.gmra.mxu1 %vm708_vm3, %v698_v3  ;;  %3521 = vmatmul.mubr.msk.f32.vlgmr.msra.gmra.mxu0 %vm911_vm4, %v901_v6  ;;  %v1207_v53 = vld [vmem:[#allocation29 + $0x18] sm:$0xff]  ;;  %v1206_v54 = vld [vmem:[#allocation29 + $0x10] sm:$0xff]  ;;  %v1204_v56 = vld [vmem:[#allocation29] sm:$0xff]  ;;  %s5541_s0 = sld [smem:[#allocation95_spill]]  ;;  %s4904_s10 = smov [#allocation65]  }
 0x251   :  { %3505 = vmatprep.subr.mxu1 %v4902_v0  ;;  %3513 = vmatprep.mubr.msk.f32.mxu1 %vm4903_vm0, %v4902_v0  ;;  %v804_v7 = vld [vmem:[%s5538_s14 + $0x18] sm:$0xff]  ;;  %v803_v8 = vld [vmem:[%s5538_s14 + $0x10] sm:$0xff]  ;;  %v802_v9 = vld [vmem:[%s5538_s14 + $0x8] sm:$0xff]  ;;  %s5542_s29 = sld [smem:[#allocation120_spill]]  ;;  %s3237_s20 = sshll.u32 %s4904_s10, 4  ;;  %s3238_s20 = int_to_ptr.vmem [resolvable:$true] %s3237_s20 }
 0x252   :  { %3523 = vmatprep.subr.mxu0 %v4902_v0  ;;  %3531 = vmatprep.mubr.msk.f32.mxu0 %vm4903_vm0, %v4902_v0  ;;  %v801_v10 = vld [vmem:[%s5538_s14] sm:$0xff]  ;;  %v3340_v58 = vld [vmem:[#allocation25] ss:$0 sm:$0xff]  ;;  %v3342_v60 = vld [vmem:[#allocation28] ss:$0 sm:$0xff]  ;;  %s5543_s7 = sld [smem:[#allocation121_spill]]  ;;  %p4710_p5 = scmp.lt.s32.totalorder %s3238_s20, %s3238_s20 }
 0x253   :  { %3506 = vmatpush3.msra.mxu1 %v804_v7  ;;  %3524 = vmatpush3.msra.mxu0 %v1007_v11  ;;  %s4905_s11 = smov [#allocation64]   ;;  %s4705_s6 = scalar_lea.vmem %s3238_s20, 128 }
 0x254   :  { %3507 = vmatprep.subr.mxu1 %v4902_v0  ;;  %3525 = vmatprep.subr.mxu0 %v4902_v0  ;;  %s3227_s15 = sshll.u32 %s4905_s11, 4  ;;  %p4706_p4 = scmp.ne.s32.totalorder %s3238_s20, %s4705_s6  ;;  %s3228_s15 = int_to_ptr.vmem [resolvable:$true] %s3227_s15 }
 0x255   :  { %3508 = vmatpush3.msra.mxu1 %v803_v8  ;;  %3526 = vmatpush3.msra.mxu0 %v1006_v12  ;;  %p4711_p6 = scmp.lt.s32.totalorder %s4705_s6, %s4705_s6 }
 0x256   :  { %3509 = vmatprep.subr.mxu1 %v4902_v0  ;;  %3527 = vmatprep.subr.mxu0 %v4902_v0 }
 0x257   :  { %3510 = vmatpush3.msra.mxu1 %v802_v9  ;;  %3528 = vmatpush3.msra.mxu0 %v1005_v13  ;;  %p4712_p7 = por %p4711_p6, %p4710_p5 }
 0x258   :  { %3511 = vmatprep.subr.mxu1 %v4902_v0  ;;  %3529 = vmatprep.subr.mxu0 %v4902_v0 }
 0x259   :  { %3512 = vmatpush3.msra.mxu1 %v801_v10  ;;  %3530 = vmatpush3.msra.mxu0 %v1004_v14  ;;  %p4713_p8 = pnand %p4712_p7, %p4706_p4 }
 0x25a   :  { %3534 = vmatprep.subr.mxu1 %v4902_v0  ;;  %3550 = vmatprep.subr.mxu0 %v4902_v0 }
 0x310   :  { %v782_v17 = vpop.f32.mrf.mxu1  ;;  %v985_v19 = vpop.f32.mrf.mxu0 }
 0x311   :  { %v783_v18 = vadd.f32 %v3332_v15, %v782_v17  ;;  %v986_v21 = vadd.f32 %v3337_v16, %v985_v19 }
 0x312   :  { %v3504_v20 = vpop.f32.mrf.mxu1  ;;  %v3522_v23 = vpop.f32.mrf.mxu0 }
 0x313   :  { %v787_v22 = vand.u32 2147483647, %v783_v18  ;;  %v990_v24 = vand.u32 2147483647, %v986_v21  ;;  %v989_v44 = vmax.f32 %v986_v21, 0.0  ;;  %v786_v45 = vmax.f32 %v783_v18, 0.0 }
 0x315   :  { %v788_v25 = vsub.f32 0.0, %v787_v22  ;;  %v991_v26 = vsub.f32 0.0, %v990_v24 }
 0x317   :  { %v789_v27 = vmul.f32 1.442695, %v788_v25  ;;  %v992_v28 = vmul.f32 1.442695, %v991_v26 }
 0x319   :  { %3857 = vpow2.f32 %v789_v27 }
 0x31a   :  { %3859 = vpow2.f32 %v992_v28 }
 0x326   :  { %v3858_v29 = vpop.eup %3857 }
 0x327   :  { %v3860_v30 = vpop.eup %3859  ;;  %v791_v31 = vadd.f32 1.0, %v3858_v29  ;;  %v794_v34 = vmul.f32 -0.5, %v3858_v29  ;;  %v797_v38 = vand.u32 2147483647, %v3858_v29 }
 0x328   :  { %v994_v32 = vadd.f32 1.0, %v3860_v30  ;;  %v997_v33 = vmul.f32 -0.5, %v3860_v30  ;;  %v1000_v37 = vand.u32 2147483647, %v3860_v30 }
 0x329   :  { %3861 = vlog2.f32 %v791_v31  ;;  %v795_v36 = vadd.f32 1.0, %v794_v34  ;;  %vm798_vm6 = vcmp.lt.f32.partialorder %v797_v38, 0.0004427343  ;;  %v1303_v31 = vld [vmem:[#allocation8] sm:$0xff] }
 0x32a   :  { %3863 = vlog2.f32 %v994_v32  ;;  %v998_v35 = vadd.f32 1.0, %v997_v33  ;;  %vm1001_vm5 = vcmp.lt.f32.partialorder %v1000_v37, 0.0004427343  ;;  %v1463_v33 = vld [vmem:[#allocation34 + $0x18] sm:$0xff]  ;;  %v1462_v34 = vld [vmem:[#allocation34 + $0x10] sm:$0xff] }
 0x32b   :  { %v796_v43 = vmul.f32 %v3858_v29, %v795_v36  ;;  %v1460_v36 = vld [vmem:[#allocation34] sm:$0xff]  ;;  %v3335_v37 = vld [vmem:[#allocation19] ss:$0 sm:$0xff] }
 0x32c   :  { %v999_v40 = vmul.f32 %v3860_v30, %v998_v35  ;;  %v1461_v35 = vld [vmem:[#allocation34 + $0x8] sm:$0xff] }
 0x336   :  { %v3862_v39 = vpop.eup %3861 }
 0x337   :  { %v3864_v41 = vpop.eup %3863  ;;  %v793_v42 = vmul.f32 0.6931472, %v3862_v39 }
 0x338   :  { %v996_v46 = vmul.f32 0.6931472, %v3864_v41  ;;  %v1613_v41 = vld [vmem:[#allocation35 + $0x18] sm:$0xff] }
 0x339   :  { %v799_v47 = vsel %vm798_vm6, %v796_v43, %v793_v42 }
 0x33a   :  { %v800_v48 = vadd.f32 %v799_v47, %v786_v45  ;;  %v1002_v50 = vsel %vm1001_vm5, %v999_v40, %v996_v46  ;;  %v3345_v40 = vld [vmem:[#allocation31] ss:$0 sm:$0xff]  ;;  %v1612_v46 = vld [vmem:[#allocation35 + $0x10] sm:$0xff] }
 0x33b   :  { %v1003_v51 = vadd.f32 %v1002_v50, %v989_v44  ;;  %v1611_v50 = vld [vmem:[#allocation35 + $0x8] sm:$0xff] }
 0x33c   :  { %3514 = vmatmul.mubr.msk.f32.vlgmr.msra.gmra.mxu1 %vm812_vm7, %v800_v48 }
 0x33d   :  { %3535 = vmatpush3.msk.msra.mxu1 %vm712_vm1, %v1104_v49  ;;  %3536 = vmatprep.mubr.msk.f32.mxu1 %vm4903_vm0, %v4902_v0 }
 0x33e   :  { %3532 = vmatmul.mubr.msk.f32.vlgmr.msra.gmra.mxu0 %vm812_vm7, %v1003_v51  ;;  %3539 = vmatprep.subr.mxu1 %v4902_v0 }
 0x33f   :  { %3552 = vmatprep.mubr.msk.f32.mxu0 %vm4903_vm0, %v4902_v0 }
 0x340   :  { %3537 = vmatmul.mubr.msk.f32.vlgmr.msra.gmra.mxu1 %vm1112_vm8, %v1103_v52 }
 0x341   :  { %3547 = vmatprep.mubr.msk.f32.mxu1 %vm4903_vm0, %v4902_v0  ;;  %3540 = vmatpush3.msra.mxu1 %v1207_v53 }
 0x342   :  { %3541 = vmatprep.subr.mxu1 %v4902_v0 }
 0x343   :  { %3542 = vmatpush3.msra.mxu1 %v1206_v54 }
 0x344   :  { %3543 = vmatprep.subr.mxu1 %v4902_v0 }
 0x345   :  { %3544 = vmatpush3.msra.mxu1 %v1205_v55 }
 0x346   :  { %3545 = vmatprep.subr.mxu1 %v4902_v0 }
 0x347   :  { %3546 = vmatpush3.msra.mxu1 %v1204_v56 }
 0x348   :  { %3560 = vmatprep.subr.mxu1 %v4902_v0 }
 0x3fc   :  { %v5298_v57 = vpop.f32.mrf.mxu1 }
 0x3fd   :  { %v5315_v38 = vadd.f32 %v3335_v37, %v5298_v57 }
 0x3fe   :  { %v3515_v59 = vpop.f32.mrf.mxu1  ;;  %v1084_v61 = vpop.f32.mrf.mxu0 }
 0x3ff   :  { %v1085_v62 = vadd.f32 %v3340_v58, %v1084_v61  ;;  %v887_v39 = vand.u32 2147483647, %v5315_v38 }
 0x400   :  { %v1185_v63 = vpop.f32.mrf.mxu1  ;;  %v3533_v1 = vpop.f32.mrf.mxu0 }
 0x401   :  { %v1186_v2 = vadd.f32 %v3342_v60, %v1185_v63  ;;  %v1089_v3 = vand.u32 2147483647, %v1085_v62  ;;  %v1088_v22 = vmax.f32 %v1085_v62, 0.0  ;;  %v888_v42 = vsub.f32 0.0, %v887_v39 }
 0x402   :  { %v3538_v4 = vpop.f32.mrf.mxu1 }
 0x403   :  { %v1190_v5 = vand.u32 2147483647, %v1186_v2  ;;  %v1090_v6 = vsub.f32 0.0, %v1089_v3  ;;  %v1189_v27 = vmax.f32 %v1186_v2, 0.0  ;;  %v889_v51 = vmul.f32 1.442695, %v888_v42 }
 0x405   :  { %v1191_v7 = vsub.f32 0.0, %v1190_v5  ;;  %v1091_v8 = vmul.f32 1.442695, %v1090_v6 }
 0x407   :  { %v1192_v9 = vmul.f32 1.442695, %v1191_v7  ;;  %3865 = vpow2.f32 %v1091_v8  ;;  %v1378_v7 = vld [vmem:[%s5539_s16] sm:$0xff] }
 0x409   :  { %3867 = vpow2.f32 %v1192_v9  ;;  %v1459_v9 = vld [vmem:[#allocation32 + $0x18] sm:$0xff] }
 0x414   :  { %v3866_v10 = vpop.eup %3865 }
 0x415   :  { %v1093_v11 = vadd.f32 1.0, %v3866_v10  ;;  %v1096_v14 = vmul.f32 -0.5, %v3866_v10  ;;  %v1099_v17 = vand.u32 2147483647, %v3866_v10 }
 0x416   :  { %v3868_v12 = vpop.eup %3867 }
 0x417   :  { %v1194_v13 = vadd.f32 1.0, %v3868_v12  ;;  %3869 = vlog2.f32 %v1093_v11  ;;  %v1197_v15 = vmul.f32 -0.5, %v3868_v12  ;;  %v1097_v16 = vadd.f32 1.0, %v1096_v14  ;;  %v1458_v11 = vld [vmem:[#allocation32 + $0x10] sm:$0xff] }
 0x418   :  { %v1200_v19 = vand.u32 2147483647, %v3868_v12  ;;  %vm1100_vm9 = vcmp.lt.f32.partialorder %v1099_v17, 0.0004427343 }
 0x419   :  { %3871 = vlog2.f32 %v1194_v13  ;;  %v1198_v18 = vadd.f32 1.0, %v1197_v15  ;;  %v1098_v20 = vmul.f32 %v3866_v10, %v1097_v16  ;;  %v1457_v13 = vld [vmem:[#allocation32 + $0x8] sm:$0xff]  ;;  %v886_v15 = vmax.f32 %v5315_v38, 0.0  ;;  %v1456_v16 = vld [vmem:[#allocation32] sm:$0xff] }
 0x41a   :  { %vm1201_vm10 = vcmp.lt.f32.partialorder %v1200_v19, 0.0004427343  ;;  %3873 = vpow2.f32 %v889_v51  ;;  %v1812_v51 = vld [vmem:[#allocation40 + $0x10] sm:$0xff] }
 0x41b   :  { %v1199_v26 = vmul.f32 %v3868_v12, %v1198_v18  ;;  %v1610_v18 = vld [vmem:[#allocation35] sm:$0xff] }
 0x424   :  { %v3870_v21 = vpop.eup %3869 }
 0x425   :  { %v1095_v24 = vmul.f32 0.6931472, %v3870_v21 }
 0x426   :  { %v3872_v23 = vpop.eup %3871 }
 0x427   :  { %v1196_v25 = vmul.f32 0.6931472, %v3872_v23  ;;  %v1101_v28 = vsel %vm1100_vm9, %v1098_v20, %v1095_v24  ;;  %v3874_v54 = vpop.eup %3873 }
 0x428   :  { %v5300_v30 = vadd.f32 %v1101_v28, %v1088_v22  ;;  %v891_v57 = vadd.f32 1.0, %v3874_v54  ;;  %v894_v62 = vmul.f32 -0.5, %v3874_v54  ;;  %v897_v8 = vand.u32 2147483647, %v3874_v54  ;;  %v1712_v28 = vld [vmem:[%s5540_s30 + $0x8] sm:$0xff] }
 0x429   :  { %v1202_v29 = vsel %vm1201_vm10, %v1199_v26, %v1196_v25  ;;  %v1714_v26 = vld [vmem:[%s5540_s30 + $0x18] sm:$0xff] }
 0x42a   :  { %v1203_v32 = vadd.f32 %v1202_v29, %v1189_v27  ;;  %3551 = vmatpush3.msra.mxu0 %v5300_v30  ;;  %v895_v5 = vadd.f32 1.0, %v894_v62  ;;  %vm898_vm14 = vcmp.lt.f32.partialorder %v897_v8, 0.0004427343  ;;  %v1713_v27 = vld [vmem:[%s5540_s30 + $0x10] sm:$0xff]  ;;  %v1711_v29 = vld [vmem:[%s5540_s30] sm:$0xff] }
 0x42b   :  { %3553 = vmatmul.mubr.msk.f32.vlgmr.msra.gmra.mxu0 %vm1304_vm11, %v1303_v31  ;;  %3555 = vmatprep.subr.mxu0 %v4902_v0 }
 0x42c   :  { %3548 = vmatmul.mubr.msk.f32.vlgmr.msra.gmra.mxu1 %vm812_vm7, %v1203_v32  ;;  %3557 = vmatprep.mubr.msk.f32.mxu0 %vm4903_vm0, %v4902_v0  ;;  %v896_v12 = vmul.f32 %v3874_v54, %v895_v5  ;;  %v3353_v32 = vld [vmem:[#allocation37] ss:$0 sm:$0xff]  ;;  %v3354_v54 = vld [vmem:[#allocation38] ss:$0 sm:$0xff] }
 0x42d   :  { %3568 = vmatprep.mubr.msk.f32.mxu1 %vm4903_vm0, %v4902_v0  ;;  %3561 = vmatpush3.msra.mxu1 %v1463_v33 }
 0x42e   :  { %3562 = vmatprep.subr.mxu1 %v4902_v0 }
 0x42f   :  { %3563 = vmatpush3.msra.mxu1 %v1462_v34 }
 0x430   :  { %3564 = vmatprep.subr.mxu1 %v4902_v0 }
 0x431   :  { %3565 = vmatpush3.msra.mxu1 %v1461_v35 }
 0x432   :  { %3566 = vmatprep.subr.mxu1 %v4902_v0 }
 0x433   :  { %3567 = vmatpush3.msra.mxu1 %v1460_v36 }
 0x434   :  { %3582 = vmatprep.subr.mxu1 %v4902_v0 }
 0x4eb   :  { %v1374_v44 = vpop.f32.mrf.mxu0 }
 0x4ec   :  { %v1284_v43 = vpop.f32.mrf.mxu1  ;;  %3569 = vmatmul.mubr.msk.f32.vlgmr.msra.gmra.mxu1 %vm812_vm7, %v1374_v44 }
 0x4ed   :  { %v1285_v45 = vadd.f32 %v3345_v40, %v1284_v43  ;;  %v3554_v48 = vpop.f32.mrf.mxu0  ;;  %3583 = vmatpush3.msra.mxu1 %v1613_v41  ;;  %3590 = vmatprep.mubr.msk.f32.mxu1 %vm4903_vm0, %v4902_v0 }
 0x4ee   :  { %v3549_v47 = vpop.f32.mrf.mxu1  ;;  %3584 = vmatprep.subr.mxu1 %v4902_v0 }
 0x4ef   :  { %v1289_v49 = vand.u32 2147483647, %v1285_v45  ;;  %3585 = vmatpush3.msra.mxu1 %v1612_v46  ;;  %v1288_v2 = vmax.f32 %v1285_v45, 0.0 }
 0x4f0   :  { %3586 = vmatprep.subr.mxu1 %v4902_v0 }
 0x4f1   :  { %v1290_v52 = vsub.f32 0.0, %v1289_v49  ;;  %3587 = vmatpush3.msra.mxu1 %v1611_v50  ;;  %v1813_v50 = vld [vmem:[#allocation40 + $0x18] sm:$0xff] }
 0x4f2   :  { %3588 = vmatprep.subr.mxu1 %v4902_v0 }
 0x4f3   :  { %v1291_v53 = vmul.f32 1.442695, %v1290_v52  ;;  %3589 = vmatpush3.msra.mxu1 %v1610_v18  ;;  %v1811_v52 = vld [vmem:[#allocation40 + $0x8] sm:$0xff]  ;;  %v1894_v18 = vld [vmem:[#allocation10] sm:$0xff] }
 0x4f4   :  { %3604 = vmatprep.subr.mxu1 %v4902_v0 }
 0x4f5   :  { %3875 = vpow2.f32 %v1291_v53  ;;  %v1810_v53 = vld [vmem:[#allocation40] sm:$0xff] }
 0x502   :  { %v3876_v55 = vpop.eup %3875 }
 0x503   :  { %v1293_v56 = vadd.f32 1.0, %v3876_v55  ;;  %v1296_v58 = vmul.f32 -0.5, %v3876_v55  ;;  %v1299_v60 = vand.u32 2147483647, %v3876_v55 }
 0x505   :  { %3877 = vlog2.f32 %v1293_v56  ;;  %v1297_v59 = vadd.f32 1.0, %v1296_v58  ;;  %vm1300_vm12 = vcmp.lt.f32.partialorder %v1299_v60, 0.0004427343 }
 0x506   :  { %3879 = vlog2.f32 %v891_v57 }
 0x507   :  { %v1298_v1 = vmul.f32 %v3876_v55, %v1297_v59 }
 0x512   :  { %v3878_v61 = vpop.eup %3877 }
 0x513   :  { %v1295_v63 = vmul.f32 0.6931472, %v3878_v61  ;;  %v3880_v3 = vpop.eup %3879 }
 0x514   :  { %v893_v10 = vmul.f32 0.6931472, %v3880_v3 }
 0x515   :  { %v1301_v4 = vsel %vm1300_vm12, %v1298_v1, %v1295_v63 }
 0x516   :  { %v5324_v6 = vadd.f32 %v1301_v4, %v1288_v2  ;;  %v899_v14 = vsel %vm898_vm14, %v896_v12, %v893_v10  ;;  %v2042_v10 = vld [vmem:[%s5541_s0] sm:$0xff]  ;;  %v2118_v12 = vld [vmem:[#allocation43 + $0x10] sm:$0xff] }
 0x517   :  { %v900_v17 = vadd.f32 %v899_v14, %v886_v15  ;;  %v2116_v14 = vld [vmem:[#allocation43] sm:$0xff]  ;;  %v3356_v15 = vld [vmem:[#allocation41] ss:$0 sm:$0xff] }
 0x518   :  { %3556 = vmatpush3.msk.msra.mxu0 %vm915_vm2, %v5324_v6 }
 0x519   :  { %3558 = vmatmul.mubr.msk.f32.vlgmr.msra.gmra.mxu0 %vm1379_vm13, %v1378_v7  ;;  %3571 = vmatprep.subr.mxu0 %v4902_v0 }
 0x51a   :  { %3572 = vmatpush3.msra.mxu0 %v1459_v9  ;;  %3579 = vmatprep.mubr.msk.f32.mxu0 %vm4903_vm0, %v4902_v0 }
 0x51b   :  { %3573 = vmatprep.subr.mxu0 %v4902_v0 }
 0x51c   :  { %3574 = vmatpush3.msra.mxu0 %v1458_v11  ;;  %v2119_v11 = vld [vmem:[#allocation43 + $0x18] sm:$0xff] }
 0x51d   :  { %3575 = vmatprep.subr.mxu0 %v4902_v0 }
 0x51e   :  { %3576 = vmatpush3.msra.mxu0 %v1457_v13  ;;  %v2117_v13 = vld [vmem:[#allocation43 + $0x8] sm:$0xff] }
 0x51f   :  { %3577 = vmatprep.subr.mxu0 %v4902_v0 }
 0x520   :  { %3578 = vmatpush3.msra.mxu0 %v1456_v16 }
 0x521   :  { %3580 = vmatmul.mubr.msk.f32.vlgmr.msra.gmra.mxu0 %vm812_vm7, %v900_v17  ;;  %3593 = vmatprep.subr.mxu0 %v4902_v0 }
 0x522   :  { %3601 = vmatprep.mubr.msk.f32.mxu0 %vm4903_vm0, %v4902_v0  ;;  %3594 = vmatpush3.msra.mxu0 %v1714_v26  ;;  %v2120_v26 = vld [vmem:[#allocation44] sm:$0xff] }
 0x523   :  { %3595 = vmatprep.subr.mxu0 %v4902_v0 }
 0x524   :  { %3596 = vmatpush3.msra.mxu0 %v1713_v27 }
 0x525   :  { %3597 = vmatprep.subr.mxu0 %v4902_v0 }
 0x526   :  { %3598 = vmatpush3.msra.mxu0 %v1712_v28  ;;  %v2351_v28 = vld [vmem:[#allocation47 + $0x18] sm:$0xff] }
 0x527   :  { %3599 = vmatprep.subr.mxu0 %v4902_v0 }
 0x528   :  { %3600 = vmatpush3.msra.mxu0 %v1711_v29  ;;  %v2350_v29 = vld [vmem:[#allocation47 + $0x10] sm:$0xff] }
 0x529   :  { %3615 = vmatprep.subr.mxu0 %v4902_v0 }
 0x5ac   :  { %v1533_v19 = vpop.f32.mrf.mxu1 }
 0x5ae   :  { %v3570_v20 = vpop.f32.mrf.mxu1 }
 0x5af   :  { %v1968_v20 = vld [vmem:[#allocation11] sm:$0xff] }
 0x5d9   :  { %v1452_v21 = vpop.f32.mrf.mxu0 }
 0x5da   :  { %3591 = vmatmul.mubr.msk.f32.vlgmr.msra.gmra.mxu1 %vm812_vm7, %v1452_v21 }
 0x5db   :  { %v3559_v22 = vpop.f32.mrf.mxu0  ;;  %3612 = vmatprep.mubr.msk.f32.mxu1 %vm4903_vm0, %v4902_v0  ;;  %3605 = vmatpush3.msra.mxu1 %v1813_v50 }
 0x5dc   :  { %3606 = vmatprep.subr.mxu1 %v4902_v0  ;;  %v2123_v22 = vld [vmem:[#allocation44 + $0x18] sm:$0xff] }
 0x5dd   :  { %3607 = vmatpush3.msra.mxu1 %v1812_v51 }
 0x5de   :  { %3608 = vmatprep.subr.mxu1 %v4902_v0 }
 0x5df   :  { %3609 = vmatpush3.msra.mxu1 %v1811_v52  ;;  %v3366_v52 = vld [vmem:[#allocation49] ss:$0 sm:$0xff] }
 0x5e0   :  { %3610 = vmatprep.subr.mxu1 %v4902_v0 }
 0x5e1   :  { %v1606_v23 = vpop.f32.mrf.mxu0  ;;  %3611 = vmatpush3.msra.mxu1 %v1810_v53 }
 0x5e2   :  { %v1607_v24 = vadd.f32 %v1606_v23, %v1533_v19  ;;  %3625 = vmatprep.subr.mxu1 %v4902_v0  ;;  %v2122_v23 = vld [vmem:[#allocation44 + $0x10] sm:$0xff] }
 0x5e3   :  { %v3581_v25 = vpop.f32.mrf.mxu0 }
 0x69a   :  { %v1683_v31 = vpop.f32.mrf.mxu1 }
 0x69b   :  { %v1687_v33 = vadd.f32 %v1683_v31, %v1607_v24  ;;  %v2121_v24 = vld [vmem:[#allocation44 + $0x8] sm:$0xff] }
 0x69c   :  { %v3592_v34 = vpop.f32.mrf.mxu1  ;;  %v2349_v31 = vld [vmem:[#allocation47 + $0x8] sm:$0xff] }
 0x69d   :  { %v1695_v35 = vadd.f32 %v3353_v32, %v1687_v33  ;;  %v2348_v32 = vld [vmem:[#allocation47] sm:$0xff]  ;;  %v2273_v33 = vld [vmem:[#allocation46 + $0x18] sm:$0xff] }
 0x69f   :  { %v1697_v36 = vand.u32 2147483647, %v1695_v35  ;;  %v1696_v47 = vmax.f32 %v1695_v35, 0.0  ;;  %v2272_v35 = vld [vmem:[#allocation46 + $0x10] sm:$0xff] }
 0x6a1   :  { %v1698_v37 = vsub.f32 0.0, %v1697_v36 }
 0x6a3   :  { %v1699_v38 = vmul.f32 1.442695, %v1698_v37  ;;  %v2271_v37 = vld [vmem:[#allocation46 + $0x8] sm:$0xff] }
 0x6a5   :  { %3881 = vpow2.f32 %v1699_v38 }
 0x6b2   :  { %v3882_v39 = vpop.eup %3881 }
 0x6b3   :  { %v1701_v40 = vadd.f32 1.0, %v3882_v39  ;;  %v1704_v41 = vmul.f32 -0.5, %v3882_v39  ;;  %v1707_v43 = vand.u32 2147483647, %v3882_v39 }
 0x6b5   :  { %3883 = vlog2.f32 %v1701_v40  ;;  %v1705_v42 = vadd.f32 1.0, %v1704_v41  ;;  %vm1708_vm15 = vcmp.lt.f32.partialorder %v1707_v43, 0.0004427343  ;;  %v2452_v43 = vld [vmem:[#allocation50 + $0x18] sm:$0xff] }
 0x6b7   :  { %v1706_v46 = vmul.f32 %v3882_v39, %v1705_v42  ;;  %v2270_v39 = vld [vmem:[#allocation46] sm:$0xff] }
 0x6c2   :  { %v3884_v44 = vpop.eup %3883 }
 0x6c3   :  { %v1703_v45 = vmul.f32 0.6931472, %v3884_v44  ;;  %v2451_v44 = vld [vmem:[#allocation50 + $0x10] sm:$0xff] }
 0x6c5   :  { %v1709_v48 = vsel %vm1708_vm15, %v1706_v46, %v1703_v45  ;;  %v2450_v45 = vld [vmem:[#allocation50 + $0x8] sm:$0xff]  ;;  %v2449_v46 = vld [vmem:[#allocation50] sm:$0xff] }
 0x6c6   :  { %v1710_v49 = vadd.f32 %v1709_v48, %v1696_v47 }
 0x6c8   :  { %3602 = vmatmul.mubr.msk.f32.vlgmr.msra.gmra.mxu0 %vm812_vm7, %v1710_v49 }
 0x6c9   :  { %3617 = vmatprep.mubr.msk.f32.mxu0 %vm4903_vm0, %v4902_v0 }
 0x788   :  { %v1791_v55 = vpop.f32.mrf.mxu0 }
 0x789   :  { %v1792_v56 = vadd.f32 %v3354_v54, %v1791_v55 }
 0x78a   :  { %v3603_v57 = vpop.f32.mrf.mxu0 }
 0x78b   :  { %v1796_v58 = vand.u32 2147483647, %v1792_v56  ;;  %v1795_v7 = vmax.f32 %v1792_v56, 0.0 }
 0x78d   :  { %v1797_v59 = vsub.f32 0.0, %v1796_v58 }
 0x78f   :  { %v1798_v60 = vmul.f32 1.442695, %v1797_v59 }
 0x791   :  { %3885 = vpow2.f32 %v1798_v60 }
 0x79e   :  { %v3886_v61 = vpop.eup %3885 }
 0x79f   :  { %v1800_v62 = vadd.f32 1.0, %v3886_v61  ;;  %v1803_v63 = vmul.f32 -0.5, %v3886_v61  ;;  %v1806_v2 = vand.u32 2147483647, %v3886_v61 }
 0x7a1   :  { %3887 = vlog2.f32 %v1800_v62  ;;  %v1804_v1 = vadd.f32 1.0, %v1803_v63  ;;  %vm1807_vm1 = vcmp.lt.f32.partialorder %v1806_v2, 0.0004427343 }
 0x7a3   :  { %v1805_v5 = vmul.f32 %v3886_v61, %v1804_v1 }
 0x7ae   :  { %v3888_v3 = vpop.eup %3887 }
 0x7af   :  { %v1802_v4 = vmul.f32 0.6931472, %v3888_v3 }
 0x7b1   :  { %v1808_v8 = vsel %vm1807_vm1, %v1805_v5, %v1802_v4 }
 0x7b2   :  { %v1809_v9 = vadd.f32 %v1808_v8, %v1795_v7  ;;  %v2551_v8 = vld [vmem:[#allocation53 + $0x18] sm:$0xff] }
 0x7b4   :  { %3613 = vmatmul.mubr.msk.f32.vlgmr.msra.gmra.mxu1 %vm812_vm7, %v1809_v9  ;;  %v2550_v9 = vld [vmem:[#allocation53 + $0x10] sm:$0xff] }
 0x7b5   :  { %3626 = vmatpush3.msk.msra.mxu1 %vm915_vm2, %v5324_v6  ;;  %3627 = vmatprep.mubr.msk.f32.mxu1 %vm4903_vm0, %v4902_v0 }
 0x7b6   :  { %3641 = vmatprep.subr.mxu1 %v4902_v0 }
 0x7b8   :  { %3628 = vmatmul.mubr.msk.f32.vlgmr.msra.gmra.mxu1 %vm1379_vm13, %v2042_v10  ;;  %v2549_v10 = vld [vmem:[#allocation53 + $0x8] sm:$0xff] }
 0x7b9   :  { %3642 = vmatpush3.msra.mxu1 %v2119_v11  ;;  %3649 = vmatprep.mubr.msk.f32.mxu1 %vm4903_vm0, %v4902_v0  ;;  %v2548_v11 = vld [vmem:[#allocation53] sm:$0xff] }
 0x7ba   :  { %3643 = vmatprep.subr.mxu1 %v4902_v0 }
 0x7bb   :  { %3644 = vmatpush3.msra.mxu1 %v2118_v12  ;;  %v2632_v12 = vld [vmem:[#allocation13] sm:$0x3] }
 0x7bc   :  { %3645 = vmatprep.subr.mxu1 %v4902_v0 }
 0x7bd   :  { %3646 = vmatpush3.msra.mxu1 %v2117_v13  ;;  %v3367_v13 = vld [vmem:[#allocation52] ss:$0 sm:$0xff] }
 0x7be   :  { %3647 = vmatprep.subr.mxu1 %v4902_v0 }
 0x7bf   :  { %3648 = vmatpush3.msra.mxu1 %v2116_v14 }
 0x7c0   :  { %3650 = vmatmul.mubr.msk.f32.vlgmr.msra.gmra.mxu1 %vm812_vm7, %v5300_v30  ;;  %3663 = vmatprep.subr.mxu1 %v4902_v0 }
 0x7c1   :  { %3671 = vmatprep.mubr.msk.f32.mxu1 %vm4903_vm0, %v4902_v0  ;;  %3664 = vmatpush3.msra.mxu1 %v2351_v28 }
 0x7c2   :  { %3665 = vmatprep.subr.mxu1 %v4902_v0 }
 0x7c3   :  { %3666 = vmatpush3.msra.mxu1 %v2350_v29 }
 0x7c4   :  { %3667 = vmatprep.subr.mxu1 %v4902_v0 }
 0x7c5   :  { %3668 = vmatpush3.msra.mxu1 %v2349_v31  ;;  %v2787_v31 = vld [vmem:[#allocation58 + $0x18] sm:$0xff] }
 0x7c6   :  { %3669 = vmatprep.subr.mxu1 %v4902_v0 }
 0x7c7   :  { %3670 = vmatpush3.msra.mxu1 %v2348_v32  ;;  %v2786_v32 = vld [vmem:[#allocation58 + $0x10] sm:$0xff] }
 0x7c8   :  { %3685 = vmatprep.subr.mxu1 %v4902_v0 }
 0x874   :  { %v1890_v16 = vpop.f32.mrf.mxu1 }
 0x875   :  { %v5378_v17 = vadd.f32 %v3356_v15, %v1890_v16 }
 0x876   :  { %v3614_v19 = vpop.f32.mrf.mxu1 }
 0x877   :  { %3217 = vst.msk [vmem:[#allocation64] sm:$0xff] %vm812_vm7, %v5378_v17  ;;  %3616 = vmatpush3.msra.mxu0 %v5378_v17 }
 0x878   :  { %3618 = vmatmul.mubr.msk.f32.vlgmr.msra.gmra.mxu0 %vm1304_vm11, %v1894_v18  ;;  %3620 = vmatprep.subr.mxu0 %v4902_v0  ;;  %v2112_v30 = vpop.f32.mrf.mxu1 }
 0x879   :  { %3621 = vmatpush3.msra.mxu0 %v5378_v17  ;;  %3622 = vmatprep.mubr.msk.f32.mxu0 %vm4903_vm0, %v4902_v0 }
 0x87a   :  { %v3629_v21 = vpop.f32.mrf.mxu1  ;;  %3630 = vmatprep.subr.mxu0 %v4902_v0  ;;  %3672 = vmatmul.mubr.msk.f32.vlgmr.msra.gmra.mxu1 %vm812_vm7, %v2112_v30 }
 0x87b   :  { %3693 = vmatprep.mubr.msk.f32.mxu1 %vm4903_vm0, %v4902_v0  ;;  %3686 = vmatpush3.msra.mxu1 %v2551_v8 }
 0x87c   :  { %3623 = vmatmul.mubr.msk.f32.vlgmr.msra.gmra.mxu0 %vm1304_vm11, %v1968_v20  ;;  %3687 = vmatprep.subr.mxu1 %v4902_v0 }
 0x87d   :  { %3631 = vmatpush3.msra.mxu0 %v2123_v22  ;;  %3638 = vmatprep.mubr.msk.f32.mxu0 %vm4903_vm0, %v4902_v0 }
 0x87e   :  { %3632 = vmatprep.subr.mxu0 %v4902_v0  ;;  %3688 = vmatpush3.msra.mxu1 %v2550_v9 }
 0x87f   :  { %3633 = vmatpush3.msra.mxu0 %v2122_v23  ;;  %3689 = vmatprep.subr.mxu1 %v4902_v0 }
 0x880   :  { %v2266_v25 = vpop.f32.mrf.mxu1  ;;  %3634 = vmatprep.subr.mxu0 %v4902_v0  ;;  %3690 = vmatpush3.msra.mxu1 %v2549_v10 }
 0x881   :  { %3635 = vmatpush3.msra.mxu0 %v2121_v24  ;;  %3691 = vmatprep.subr.mxu1 %v4902_v0 }
 0x882   :  { %v3651_v27 = vpop.f32.mrf.mxu1  ;;  %3636 = vmatprep.subr.mxu0 %v4902_v0  ;;  %3692 = vmatpush3.msra.mxu1 %v2548_v11 }
 0x883   :  { %3637 = vmatpush3.msra.mxu0 %v2120_v26  ;;  %3701 = vmatprep.subr.mxu1 %v4902_v0 }
 0x884   :  { %3652 = vmatprep.subr.mxu0 %v4902_v0 }
 0x938   :  { %v1964_v34 = vpop.f32.mrf.mxu0 }
 0x939   :  { %3639 = vmatmul.mubr.msk.f32.vlgmr.msra.gmra.mxu0 %vm812_vm7, %v1964_v34 }
 0x93a   :  { %3653 = vmatpush3.msra.mxu0 %v2273_v33  ;;  %v3619_v36 = vpop.f32.mrf.mxu0  ;;  %3660 = vmatprep.mubr.msk.f32.mxu0 %vm4903_vm0, %v4902_v0  ;;  %v2421_v41 = vpop.f32.mrf.mxu1  ;;  %v2785_v33 = vld [vmem:[#allocation58 + $0x8] sm:$0xff] }
 0x93b   :  { %3654 = vmatprep.subr.mxu0 %v4902_v0  ;;  %v2936_v36 = vld [vmem:[#allocation59 + $0x18] sm:$0xff] }
 0x93c   :  { %3655 = vmatpush3.msra.mxu0 %v2272_v35  ;;  %v2038_v38 = vpop.f32.mrf.mxu0  ;;  %v3673_v42 = vpop.f32.mrf.mxu1  ;;  %v2784_v35 = vld [vmem:[#allocation58] sm:$0xff] }
 0x93d   :  { %3656 = vmatprep.subr.mxu0 %v4902_v0 }
 0x93e   :  { %3657 = vmatpush3.msra.mxu0 %v2271_v37  ;;  %v3624_v40 = vpop.f32.mrf.mxu0 }
 0x93f   :  { %3658 = vmatprep.subr.mxu0 %v4902_v0  ;;  %v3369_v40 = vld [vmem:[#allocation55] ss:$0 sm:$0xff] }
 0x940   :  { %3659 = vmatpush3.msra.mxu0 %v2270_v39  ;;  %v2934_v39 = vld [vmem:[#allocation59 + $0x8] sm:$0xff] }
 0x941   :  { %3661 = vmatmul.mubr.msk.f32.vlgmr.msra.gmra.mxu0 %vm812_vm7, %v2038_v38  ;;  %3674 = vmatprep.subr.mxu0 %v4902_v0  ;;  %v2935_v38 = vld [vmem:[#allocation59 + $0x10] sm:$0xff] }
 0x942   :  { %3682 = vmatprep.mubr.msk.f32.mxu0 %vm4903_vm0, %v4902_v0  ;;  %3675 = vmatpush3.msra.mxu0 %v2452_v43  ;;  %v2706_v43 = vld [vmem:[#allocation14] sm:$0x3] }
 0x943   :  { %3676 = vmatprep.subr.mxu0 %v4902_v0 }
 0x944   :  { %3677 = vmatpush3.msra.mxu0 %v2451_v44 }
 0x945   :  { %3678 = vmatprep.subr.mxu0 %v4902_v0 }
 0x946   :  { %3679 = vmatpush3.msra.mxu0 %v2450_v45  ;;  %v2783_v45 = vld [vmem:[#allocation56 + $0x18] sm:$0xff] }
 0x947   :  { %3680 = vmatprep.subr.mxu0 %v4902_v0 }
 0x948   :  { %3681 = vmatpush3.msra.mxu0 %v2449_v46  ;;  %v2782_v46 = vld [vmem:[#allocation56 + $0x10] sm:$0xff] }
 0x949   :  { %3696 = vmatprep.subr.mxu0 %v4902_v0 }
 0x9f9   :  { %v2193_v47 = vpop.f32.mrf.mxu0 }
 0x9fa   :  { %v2267_v49 = vadd.f32 %v2266_v25, %v2193_v47  ;;  %v2781_v47 = vld [vmem:[#allocation56 + $0x8] sm:$0xff] }
 0x9fb   :  { %v3640_v48 = vpop.f32.mrf.mxu0 }
 0x9fc   :  { %v2780_v48 = vld [vmem:[#allocation56] sm:$0xff] }
 0xa01   :  { %v2343_v50 = vpop.f32.mrf.mxu0 }
 0xa02   :  { %v2347_v51 = vadd.f32 %v2343_v50, %v2267_v49  ;;  %v2933_v49 = vld [vmem:[#allocation59] sm:$0xff] }
 0xa03   :  { %v3662_v53 = vpop.f32.mrf.mxu0 }
 0xa04   :  { %v2425_v54 = vadd.f32 %v2421_v41, %v2347_v51 }
 0xa06   :  { %v2433_v55 = vadd.f32 %v3366_v52, %v2425_v54 }
 0xa08   :  { %v2435_v56 = vand.u32 2147483647, %v2433_v55  ;;  %v2434_v4 = vmax.f32 %v2433_v55, 0.0  ;;  %v3037_v55 = vld [vmem:[%s5542_s29 + $0x18] sm:$0xff] }
 0xa0a   :  { %v2436_v57 = vsub.f32 0.0, %v2435_v56  ;;  %v3036_v56 = vld [vmem:[%s5542_s29 + $0x10] sm:$0xff] }
 0xa0c   :  { %v2437_v58 = vmul.f32 1.442695, %v2436_v57  ;;  %v3035_v57 = vld [vmem:[%s5542_s29 + $0x8] sm:$0xff] }
 0xa0e   :  { %3889 = vpow2.f32 %v2437_v58  ;;  %v3034_v58 = vld [vmem:[%s5542_s29] sm:$0xff] }
 0xa1b   :  { %v3890_v59 = vpop.eup %3889 }
 0xa1c   :  { %v2439_v60 = vadd.f32 1.0, %v3890_v59  ;;  %v2442_v61 = vmul.f32 -0.5, %v3890_v59  ;;  %v2445_v63 = vand.u32 2147483647, %v3890_v59 }
 0xa1e   :  { %3891 = vlog2.f32 %v2439_v60  ;;  %v2443_v62 = vadd.f32 1.0, %v2442_v61  ;;  %vm2446_vm2 = vcmp.lt.f32.partialorder %v2445_v63, 0.0004427343  ;;  %v3376_v61 = vld [vmem:[#allocation61] ss:$0 sm:$0xff] }
 0xa20   :  { %v2444_v3 = vmul.f32 %v3890_v59, %v2443_v62 }
 0xa2b   :  { %v3892_v1 = vpop.eup %3891 }
 0xa2c   :  { %v2441_v2 = vmul.f32 0.6931472, %v3892_v1 }
 0xa2e   :  { %v2447_v5 = vsel %vm2446_vm2, %v2444_v3, %v2441_v2 }
 0xa2f   :  { %v2448_v7 = vadd.f32 %v2447_v5, %v2434_v4 }
 0xa31   :  { %3683 = vmatmul.mubr.msk.f32.vlgmr.msra.gmra.mxu0 %vm812_vm7, %v2448_v7 }
 0xa32   :  { %3697 = vmatpush3.msra.mxu0 %v5378_v17  ;;  %3698 = vmatprep.mubr.msk.f32.mxu0 %vm4903_vm0, %v4902_v0 }
 0xa33   :  { %3706 = vmatprep.subr.mxu0 %v4902_v0 }
 0xa35   :  { %3699 = vmatmul.mubr.msk.f32.vlgmr.msra.gmra.mxu0 %vm1304_vm11, %v2632_v12 }
 0xa36   :  { %3714 = vmatprep.mubr.msk.f32.mxu0 %vm4903_vm0, %v4902_v0  ;;  %3707 = vmatpush3.msra.mxu0 %v2787_v31 }
 0xa37   :  { %3708 = vmatprep.subr.mxu0 %v4902_v0 }
 0xa38   :  { %3709 = vmatpush3.msra.mxu0 %v2786_v32 }
 0xa39   :  { %3710 = vmatprep.subr.mxu0 %v4902_v0 }
 0xa3a   :  { %3711 = vmatpush3.msra.mxu0 %v2785_v33 }
 0xa3b   :  { %3712 = vmatprep.subr.mxu0 %v4902_v0 }
 0xa3c   :  { %3713 = vmatpush3.msra.mxu0 %v2784_v35 }
 0xa3d   :  { %3728 = vmatprep.subr.mxu0 %v4902_v0 }
 0xaf1   :  { %v2529_v14 = vpop.f32.mrf.mxu0 }
 0xaf2   :  { %v2530_v15 = vadd.f32 %v3367_v13, %v2529_v14 }
 0xaf3   :  { %v3684_v16 = vpop.f32.mrf.mxu0 }
 0xaf4   :  { %v2534_v17 = vand.u32 2147483647, %v2530_v15  ;;  %v2533_v27 = vmax.f32 %v2530_v15, 0.0 }
 0xaf5   :  { %v2702_v34 = vpop.f32.mrf.mxu0 }
 0xaf6   :  { %v2535_v18 = vsub.f32 0.0, %v2534_v17  ;;  %3715 = vmatmul.mubr.msk.f32.vlgmr.msra.gmra.mxu0 %vm812_vm7, %v2702_v34  ;;  %v3136_v17 = vld [vmem:[#allocation62 + $0x18] sm:$0xff] }
 0xaf7   :  { %v3700_v37 = vpop.f32.mrf.mxu0  ;;  %3729 = vmatpush3.msra.mxu0 %v2936_v36  ;;  %3736 = vmatprep.mubr.msk.f32.mxu0 %vm4903_vm0, %v4902_v0 }
 0xaf8   :  { %v2536_v19 = vmul.f32 1.442695, %v2535_v18  ;;  %3730 = vmatprep.subr.mxu0 %v4902_v0  ;;  %v3135_v18 = vld [vmem:[#allocation62 + $0x10] sm:$0xff] }
 0xaf9   :  { %3731 = vmatpush3.msra.mxu0 %v2935_v38 }
 0xafa   :  { %3893 = vpow2.f32 %v2536_v19  ;;  %3732 = vmatprep.subr.mxu0 %v4902_v0  ;;  %v3134_v19 = vld [vmem:[#allocation62 + $0x8] sm:$0xff] }
 0xafb   :  { %3733 = vmatpush3.msra.mxu0 %v2934_v39 }
 0xafc   :  { %3734 = vmatprep.subr.mxu0 %v4902_v0 }
 0xafd   :  { %3735 = vmatpush3.msra.mxu0 %v2933_v49 }
 0xafe   :  { %3750 = vmatprep.subr.mxu0 %v4902_v0 }
 0xb07   :  { %v3894_v30 = vpop.eup %3893 }
 0xb08   :  { %v2538_v20 = vadd.f32 1.0, %v3894_v30  ;;  %v2541_v21 = vmul.f32 -0.5, %v3894_v30  ;;  %v2544_v23 = vand.u32 2147483647, %v3894_v30 }
 0xb0a   :  { %3895 = vlog2.f32 %v2538_v20  ;;  %v2542_v22 = vadd.f32 1.0, %v2541_v21  ;;  %vm2545_vm3 = vcmp.lt.f32.partialorder %v2544_v23, 0.0004427343  ;;  %v3377_v20 = vld [vmem:[%s5543_s7] ss:$0 sm:$0xff] }
 0xb0c   :  { %v2543_v26 = vmul.f32 %v3894_v30, %v2542_v22  ;;  %v3133_v30 = vld [vmem:[#allocation62] sm:$0xff] }
 0xb17   :  { %v3896_v24 = vpop.eup %3895 }
 0xb18   :  { %v2540_v25 = vmul.f32 0.6931472, %v3896_v24 }
 0xb1a   :  { %v2546_v28 = vsel %vm2545_vm3, %v2543_v26, %v2540_v25 }
 0xb1b   :  { %v2547_v29 = vadd.f32 %v2546_v28, %v2533_v27 }
 0xb1d   :  { %3694 = vmatmul.mubr.msk.f32.vlgmr.msra.gmra.mxu1 %vm812_vm7, %v2547_v29 }
 0xb1e   :  { %3703 = vmatprep.mubr.msk.f32.mxu1 %vm4903_vm0, %v4902_v0 }
 0xbb6   :  { %v2857_v50 = vpop.f32.mrf.mxu0 }
 0xbb8   :  { %v3716_v51 = vpop.f32.mrf.mxu0 }
 0xbdd   :  { %v2628_v41 = vpop.f32.mrf.mxu1 }
 0xbde   :  { %v2629_v42 = vadd.f32 %v3369_v40, %v2628_v41 }
 0xbdf   :  { %v3695_v44 = vpop.f32.mrf.mxu1 }
 0xbe0   :  { %3218 = vst.msk [vmem:[#allocation65] sm:$0xff] %vm812_vm7, %v2629_v42  ;;  %3702 = vmatpush3.msra.mxu1 %v2629_v42 }
 0xbe1   :  { %3704 = vmatmul.mubr.msk.f32.vlgmr.msra.gmra.mxu1 %vm1304_vm11, %v2706_v43  ;;  %3717 = vmatprep.subr.mxu1 %v4902_v0 }
 0xbe2   :  { %3718 = vmatpush3.msra.mxu1 %v2783_v45  ;;  %3725 = vmatprep.mubr.msk.f32.mxu1 %vm4903_vm0, %v4902_v0 }
 0xbe3   :  { %3719 = vmatprep.subr.mxu1 %v4902_v0 }
 0xbe4   :  { %3720 = vmatpush3.msra.mxu1 %v2782_v46 }
 0xbe5   :  { %3721 = vmatprep.subr.mxu1 %v4902_v0 }
 0xbe6   :  { %3722 = vmatpush3.msra.mxu1 %v2781_v47 }
 0xbe7   :  { %3723 = vmatprep.subr.mxu1 %v4902_v0 }
 0xbe8   :  { %3724 = vmatpush3.msra.mxu1 %v2780_v48 }
 0xbe9   :  { %3726 = vmatmul.mubr.msk.f32.vlgmr.msra.gmra.mxu1 %vm812_vm7, %v5324_v6  ;;  %3739 = vmatprep.subr.mxu1 %v4902_v0 }
 0xbea   :  { %3747 = vmatprep.mubr.msk.f32.mxu1 %vm4903_vm0, %v4902_v0  ;;  %3740 = vmatpush3.msra.mxu1 %v3037_v55 }
 0xbeb   :  { %3741 = vmatprep.subr.mxu1 %v4902_v0 }
 0xbec   :  { %3742 = vmatpush3.msra.mxu1 %v3036_v56 }
 0xbed   :  { %3743 = vmatprep.subr.mxu1 %v4902_v0 }
 0xbee   :  { %3744 = vmatpush3.msra.mxu1 %v3035_v57 }
 0xbef   :  { %3745 = vmatprep.subr.mxu1 %v4902_v0 }
 0xbf0   :  { %3746 = vmatpush3.msra.mxu1 %v3034_v58 }
 0xca1   :  { %v2776_v52 = vpop.f32.mrf.mxu1 }
 0xca2   :  { %3737 = vmatmul.mubr.msk.f32.vlgmr.msra.gmra.mxu0 %vm812_vm7, %v2776_v52 }
 0xca3   :  { %v3705_v53 = vpop.f32.mrf.mxu1  ;;  %3758 = vmatprep.mubr.msk.f32.mxu0 %vm4903_vm0, %v4902_v0  ;;  %3751 = vmatpush3.msra.mxu0 %v3136_v17 }
 0xca4   :  { %3752 = vmatprep.subr.mxu0 %v4902_v0 }
 0xca5   :  { %3753 = vmatpush3.msra.mxu0 %v3135_v18 }
 0xca6   :  { %3754 = vmatprep.subr.mxu0 %v4902_v0 }
 0xca7   :  { %3755 = vmatpush3.msra.mxu0 %v3134_v19 }
 0xca8   :  { %3756 = vmatprep.subr.mxu0 %v4902_v0 }
 0xca9   :  { %v2929_v6 = vpop.f32.mrf.mxu1  ;;  %3757 = vmatpush3.msra.mxu0 %v3133_v30 }
 0xcaa   :  { %v2930_v59 = vadd.f32 %v2929_v6, %v2857_v50 }
 0xcab   :  { %v3727_v54 = vpop.f32.mrf.mxu1 }
 0xd62   :  { %v3006_v60 = vpop.f32.mrf.mxu0 }
 0xd63   :  { %v3010_v62 = vadd.f32 %v3006_v60, %v2930_v59 }
 0xd64   :  { %v3738_v63 = vpop.f32.mrf.mxu0 }
 0xd65   :  { %v3018_v1 = vadd.f32 %v3376_v61, %v3010_v62 }
 0xd67   :  { %v3020_v2 = vand.u32 2147483647, %v3018_v1  ;;  %v3019_v14 = vmax.f32 %v3018_v1, 0.0 }
 0xd69   :  { %v3021_v3 = vsub.f32 0.0, %v3020_v2 }
 0xd6b   :  { %v3022_v4 = vmul.f32 1.442695, %v3021_v3 }
 0xd6d   :  { %3897 = vpow2.f32 %v3022_v4 }
 0xd7a   :  { %v3898_v5 = vpop.eup %3897 }
 0xd7b   :  { %v3024_v7 = vadd.f32 1.0, %v3898_v5  ;;  %v3027_v8 = vmul.f32 -0.5, %v3898_v5  ;;  %v3030_v10 = vand.u32 2147483647, %v3898_v5 }
 0xd7d   :  { %3899 = vlog2.f32 %v3024_v7  ;;  %v3028_v9 = vadd.f32 1.0, %v3027_v8  ;;  %vm3031_vm0 = vcmp.lt.f32.partialorder %v3030_v10, 0.0004427343 }
 0xd7f   :  { %v3029_v13 = vmul.f32 %v3898_v5, %v3028_v9 }
 0xd8a   :  { %v3900_v11 = vpop.eup %3899 }
 0xd8b   :  { %v3026_v12 = vmul.f32 0.6931472, %v3900_v11 }
 0xd8d   :  { %v3032_v15 = vsel %vm3031_vm0, %v3029_v13, %v3026_v12 }
 0xd8e   :  { %v3033_v16 = vadd.f32 %v3032_v15, %v3019_v14 }
 0xd90   :  { %3748 = vmatmul.mubr.msk.f32.vlgmr.msra.gmra.mxu1 %vm812_vm7, %v3033_v16 }
 0xe50   :  { %v3114_v21 = vpop.f32.mrf.mxu1 }
 0xe51   :  { %v3115_v22 = vadd.f32 %v3377_v20, %v3114_v21 }
 0xe52   :  { %v3749_v23 = vpop.f32.mrf.mxu1 }
 0xe53   :  { %v3119_v24 = vand.u32 2147483647, %v3115_v22  ;;  %v3118_v36 = vmax.f32 %v3115_v22, 0.0 }
 0xe55   :  { %v3120_v25 = vsub.f32 0.0, %v3119_v24 }
 0xe57   :  { %v3121_v26 = vmul.f32 1.442695, %v3120_v25 }
 0xe59   :  { %3901 = vpow2.f32 %v3121_v26 }
 0xe66   :  { %v3902_v27 = vpop.eup %3901 }
 0xe67   :  { %v3123_v28 = vadd.f32 1.0, %v3902_v27  ;;  %v3126_v29 = vmul.f32 -0.5, %v3902_v27  ;;  %v3129_v32 = vand.u32 2147483647, %v3902_v27 }
 0xe69   :  { %3903 = vlog2.f32 %v3123_v28  ;;  %v3127_v31 = vadd.f32 1.0, %v3126_v29  ;;  %vm3130_vm4 = vcmp.lt.f32.partialorder %v3129_v32, 0.0004427343 }
 0xe6b   :  { %v3128_v35 = vmul.f32 %v3902_v27, %v3127_v31 }
 0xe76   :  { %v3904_v33 = vpop.eup %3903 }
 0xe77   :  { %v3125_v34 = vmul.f32 0.6931472, %v3904_v33 }
 0xe79   :  { %v3131_v0 = vsel %vm3130_vm4, %v3128_v35, %v3125_v34 }
 0xe7a   :  { %v3132_v37 = vadd.f32 %v3131_v0, %v3118_v36 }
 0xe7c   :  { %3759 = vmatmul.mubr.msk.f32.vlgmr.msra.gmra.mxu0 %vm812_vm7, %v3132_v37 }
 0xe7d   :  { %4716 = shalt.err (!%p4713_p8)
}
 0xe7e   :  { %3240 = dma.vmem_to_hbm [thread:$0]  %s3238_s20, 128, %s5155_s8, [#allocation66]  }
 0xe7f   :  { %s4725_s24 = scalar_lea.vmem %s3228_s15, 128  ;;  %p4730_p10 = scmp.lt.s32.totalorder %s3228_s15, %s3228_s15 }
 0xe80   :  { %p4726_p9 = scmp.ne.s32.totalorder %s3228_s15, %s4725_s24  ;;  %p4731_p11 = scmp.lt.s32.totalorder %s4725_s24, %s4725_s24 }
 0xe82   :  { %p4732_p12 = por %p4731_p11, %p4730_p10 }
 0xe84   :  { %p4733_p13 = pnand %p4732_p12, %p4726_p9 }
 0xe86   :  { %4736 = shalt.err (!%p4733_p13)
}
 0xe87   :  { %3230 = dma.vmem_to_hbm [thread:$0]  %s3228_s15, 128, %s5150_s5, [#allocation4]   ;;  %v3379_v38 = vld [vmem:[%s5145_s19] ss:$0 sm:$0xff]  ;;  %vm3219_vm5 = vcmask 254976  }
 0xe88   :  { %s4906_s18 = smov [#allocation67]  }
 0xe89   :  { %s3247_s22 = sshll.u32 %s4906_s18, 4  ;;  %s3248_s22 = int_to_ptr.vmem [resolvable:$true] %s3247_s22 }
 0xe8a   :  { %s4745_s8 = scalar_lea.vmem %s3248_s22, 32  ;;  %p4750_p1 = scmp.lt.s32.totalorder %s3248_s22, %s3248_s22 }
 0xe8b   :  { %p4746_p0 = scmp.ne.s32.totalorder %s3248_s22, %s4745_s8  ;;  %p4751_p2 = scmp.lt.s32.totalorder %s4745_s8, %s4745_s8 }
 0xe8d   :  { %p4752_p3 = por %p4751_p2, %p4750_p1 }
 0xe8f   :  { %p4753_p4 = pnand %p4752_p3, %p4746_p0 }
 0xf3c   :  { %v3213_v39 = vpop.f32.mrf.mxu0 }
 0xf3d   :  { %v3214_v40 = vadd.f32 %v3379_v38, %v3213_v39 }
 0xf3e   :  { %v3760_v41 = vpop.f32.mrf.mxu0 }
 0xf3f   :  { %3220 = vst.msk [vmem:[#allocation67] sm:$0x3] %vm3219_vm5, %v3214_v40 }
 0xf40   :  { %4756 = shalt.err (!%p4753_p4)
}
 0xf41   :  { %3250 = dma.vmem_to_hbm [thread:$0]  %s3248_s22, 32, %s5160_s13, [#allocation66]  }
 0xf42   :  { %4807 = dma.done.wait [#allocation4], 128  }
 0xf43   :  { %4808 = vsyncadd [#allocation4], 4294967168 }
 0xf44   :  { %4809 = dma.done.wait [#allocation66], 160  }
 0xf45   :  { %4810 = vsyncadd [#allocation66], 4294967136 }
 0xf46   :  { %3260 = vsyncpa [#allocation3], 1 }
 0xf47   :  { %3261 = vsyncpa [#allocation6], 1 }
 0xf48   :  { %3262 = vsyncpa [#allocation9], 1 }
 0xf49   :  { %3263 = vsyncpa [#allocation12], 1 }
 0xf4a   :  { %3264 = vsyncpa [#allocation15], 1 }
 0xf4b   :  { %3265 = vsyncpa [#allocation18], 1 }
 0xf4c   :  { %3266 = vsyncpa [#allocation21], 1 }
 0xf4d   :  { %3267 = vsyncpa [#allocation24], 1 }
 0xf4e   :  { %3268 = vsyncpa [#allocation27], 1 }
 0xf4f   :  { %3269 = vsyncpa [#allocation30], 1 }
 0xf50   :  { %3270 = vsyncpa [#allocation33], 1 }
 0xf51   :  { %3271 = vsyncpa [#allocation36], 1 }
 0xf52   :  { %3272 = vsyncpa [#allocation39], 1 }
 0xf53   :  { %3273 = vsyncpa [#allocation42], 1 }
 0xf54   :  { %3274 = vsyncpa [#allocation45], 1 }
 0xf55   :  { %3275 = vsyncpa [#allocation48], 1 }
 0xf56   :  { %3276 = vsyncpa [#allocation51], 1 }
 0xf57   :  { %3277 = vsyncpa [#allocation54], 1 }
 0xf58   :  { %3278 = vsyncpa [#allocation57], 1 }
 0xf59   :  { %3279 = vsyncpa [#allocation60], 1 }
 0xf5a   :  { %3280 = vsyncpa [#allocation63], 1 }
 0xf5b   :  { %3281 = vsyncpa [#allocation4], 1 }
 0xf5c   :  { %3282 = vsyncpa [#allocation66], 1 }

</bundles_post_ra>
